<compile_context>
chip_gen: v5e
topology: v5e:2x2
jax: 0.10.0
libtpu: 0.0.40
codegen_flags: <defaults>
</compile_context>

<pallas_src>
import math
from functools import partial

import jax
import jax.numpy as jnp
from jax import lax
from jax.experimental import pallas as pl
from jax.experimental.pallas import tpu as pltpu


def _compute_vmem_limit():
    """Generation-aware VMEM budget (leave headroom for compiler scratch)."""
    try:
        info = pltpu.get_tpu_info()
        for attr in ("vmem_capacity_bytes", "vmem_size_bytes", "vmem_bytes"):
            v = getattr(info, attr, None)
            if v:
                return int(min(v - 16 * 1024 * 1024, 100 * 1024 * 1024))
    except Exception:
        pass
    return 48 * 1024 * 1024  # safe default (v7x: 64 MiB/TC physical)


_VMEM_LIMIT = _compute_vmem_limit()
# Bigger tiles when the big-VMEM (v5e/v6e) budget is available; 512 on v7x.
_TM_PREFS = (1024, 512, 256, 128) if _VMEM_LIMIT > 64 * 1024 * 1024 else (512, 256, 128)


def _pick_tile(n, prefs=_TM_PREFS):
    """Largest preferred tile that divides n, else the full dim (small shapes)."""
    for t in prefs:
        if n % t == 0:
            return t
    return n


def _heads_per_block(num_heads):
    """Process heads in pairs when possible -> 128-lane aligned strips at Dh=64."""
    return 2 if num_heads % 2 == 0 else 1


# ----------------------------------------------------------------------------
# Pallas kernels
# ----------------------------------------------------------------------------

def _dense_kernel(x_ref, w_ref, b_ref, o_ref, *, act):
    """y = x @ W_t + b  (W_t already [in, out], bf16), optional activation."""
    y = jnp.dot(x_ref[...].astype(jnp.bfloat16), w_ref[...],
                preferred_element_type=jnp.float32)
    y = y + b_ref[...]
    if act == "relu":
        y = jnp.maximum(y, 0.0)
    elif act == "gelu":
        # TODO(synk): HF BERT uses erf-gelu; tanh approximation kept (small
        #             systematic logit difference vs the torch reference).
        y = 0.5 * y * (1.0 + jnp.tanh(0.7978845608028654 * (y + 0.044715 * y * y * y)))
    o_ref[...] = y.astype(o_ref.dtype)


def dense(x2d, w_t, b, act=None):
    m, k = x2d.shape
    n = w_t.shape[1]
    tm = _pick_tile(m)
    # bf16 activations in/out, weight read once (resident across the M grid).
    cost = pl.CostEstimate(flops=2 * m * k * n, transcendentals=0,
                           bytes_accessed=m * k * 2 + k * n * 2 + m * n * 2)
    return pl.pallas_call(
        partial(_dense_kernel, act=act),
        out_shape=jax.ShapeDtypeStruct((m, n), jnp.bfloat16),
        grid=(m // tm,),
        in_specs=[pl.BlockSpec((tm, k), lambda i: (i, 0)),
                  pl.BlockSpec((k, n), lambda i: (0, 0)),   # resident weight (DMA once)
                  pl.BlockSpec((1, n), lambda i: (0, 0))],
        out_specs=pl.BlockSpec((tm, n), lambda i: (i, 0)),
        compiler_params=pltpu.CompilerParams(
            dimension_semantics=("parallel",),
            vmem_limit_bytes=_VMEM_LIMIT),
        cost_estimate=cost,
    )(x2d, w_t, b.reshape(1, n))


def _dense_add_ln_kernel(x_ref, w_ref, b_ref, r_ref, g_ref, bb_ref, o_ref):
    """y = layernorm(x @ W_t + b + residual) — fused projection epilogue."""
    y = jnp.dot(x_ref[...].astype(jnp.bfloat16), w_ref[...],
                preferred_element_type=jnp.float32)
    y = y + b_ref[...] + r_ref[...].astype(jnp.float32)
    mu = jnp.mean(y, axis=-1, keepdims=True)
    var = jnp.mean((y - mu) * (y - mu), axis=-1, keepdims=True)
    out = (y - mu) * lax.rsqrt(var + 1e-12) * g_ref[...] + bb_ref[...]
    o_ref[...] = out.astype(o_ref.dtype)


def dense_add_layernorm(x2d, w_t, b, residual, gamma, beta):
    m, k = x2d.shape
    n = w_t.shape[1]
    tm = _pick_tile(m)          # N stays full: layernorm needs the whole row
    return pl.pallas_call(
        _dense_add_ln_kernel,
        out_shape=jax.ShapeDtypeStruct((m, n), jnp.bfloat16),
        grid=(m // tm,),
        in_specs=[pl.BlockSpec((tm, k), lambda i: (i, 0)),
                  pl.BlockSpec((k, n), lambda i: (0, 0)),   # resident weight
                  pl.BlockSpec((1, n), lambda i: (0, 0)),
                  pl.BlockSpec((tm, n), lambda i: (i, 0)),
                  pl.BlockSpec((1, n), lambda i: (0, 0)),
                  pl.BlockSpec((1, n), lambda i: (0, 0))],
        out_specs=pl.BlockSpec((tm, n), lambda i: (i, 0)),
        compiler_params=pltpu.CompilerParams(
            dimension_semantics=("parallel",),
            vmem_limit_bytes=_VMEM_LIMIT),
    )(x2d, w_t, b.reshape(1, n), residual, gamma.reshape(1, n), beta.reshape(1, n))


def _layernorm_kernel(x_ref, g_ref, b_ref, o_ref):
    x = x_ref[...].astype(jnp.float32)
    mu = jnp.mean(x, axis=-1, keepdims=True)
    var = jnp.mean((x - mu) * (x - mu), axis=-1, keepdims=True)
    o_ref[...] = ((x - mu) * lax.rsqrt(var + 1e-12) * g_ref[...]
                  + b_ref[...]).astype(o_ref.dtype)


def layernorm(x2d, gamma, beta):
    m, h = x2d.shape
    tm = _pick_tile(m)
    return pl.pallas_call(
        _layernorm_kernel,
        out_shape=jax.ShapeDtypeStruct((m, h), jnp.bfloat16),
        grid=(m // tm,),
        in_specs=[pl.BlockSpec((tm, h), lambda i: (i, 0)),
                  pl.BlockSpec((1, h), lambda i: (0, 0)),
                  pl.BlockSpec((1, h), lambda i: (0, 0))],
        out_specs=pl.BlockSpec((tm, h), lambda i: (i, 0)),
        compiler_params=pltpu.CompilerParams(
            dimension_semantics=("parallel",),
            vmem_limit_bytes=_VMEM_LIMIT),
    )(x2d, gamma.reshape(1, h), beta.reshape(1, h))


def _attention_kernel(qkv_ref, mask_ref, o_ref, *, heads_per_blk, head_dim, scale):
    """One (batch, head-group) step.  qkv_ref block layout: [Q_g | K_g | V_g]."""
    gw = heads_per_blk * head_dim
    bias = (1.0 - mask_ref[0].astype(jnp.float32)) * -10000.0        # [1, S]
    outs = []
    for hh in range(heads_per_blk):
        lo, hi = hh * head_dim, (hh + 1) * head_dim
        # Ref slices: free views, no full-tile materialization (bounds register
        # pressure; slices are lane-aligned within the head-group strip).
        q = qkv_ref[0, :, lo:hi]                       # [S, Dh] bf16
        k = qkv_ref[0, :, gw + lo:gw + hi]
        v = qkv_ref[0, :, 2 * gw + lo:2 * gw + hi]
        # q @ k.T without an explicit transpose: contract both on their last dim.
        s = lax.dot_general(q, k, (((1,), (1,)), ((), ())),
                            preferred_element_type=jnp.float32)       # [S, S] f32
        s = s * scale + bias
        s = s - jnp.max(s, axis=-1, keepdims=True)
        p = jnp.exp(s)
        p = p * pl.reciprocal(jnp.sum(p, axis=-1, keepdims=True), approx=True)
        outs.append(jnp.dot(p.astype(jnp.bfloat16), v,
                            preferred_element_type=jnp.float32))
    out = outs[0] if heads_per_blk == 1 else jnp.concatenate(outs, axis=-1)
    # single lane-dense [S, gw] store for the head group
    o_ref[0] = out.astype(o_ref.dtype)


def attention(qkv_bsg, mask_b1s, num_heads, head_dim):
    b, s, three_h = qkv_bsg.shape
    h = num_heads * head_dim
    hp = _heads_per_block(num_heads)
    n_grp = num_heads // hp
    gw = hp * head_dim
    return pl.pallas_call(
        partial(_attention_kernel, heads_per_blk=hp, head_dim=head_dim,
                scale=1.0 / math.sqrt(head_dim)),
        out_shape=jax.ShapeDtypeStruct((b, s, h), jnp.bfloat16),
        grid=(b, n_grp),
        in_specs=[pl.BlockSpec((1, s, 3 * gw), lambda i, g: (i, 0, g)),
                  pl.BlockSpec((1, 1, s), lambda i, g: (i, 0, 0))],
        out_specs=pl.BlockSpec((1, s, gw), lambda i, g: (i, 0, g)),
        compiler_params=pltpu.CompilerParams(
            dimension_semantics=("parallel", "parallel"),
            vmem_limit_bytes=_VMEM_LIMIT),
    )(qkv_bsg, mask_b1s)


def _head_kernel(h_ref, w1_ref, b1_ref, w2_ref, b2_ref, o_ref):
    # F.max_pool1d(last_hidden_state, hidden_size).squeeze(2): max over hidden dim.
    i = pl.program_id(0)
    pooled = jnp.max(h_ref[0].astype(jnp.float32), axis=-1)           # [S]
    pooled = pooled.reshape(1, -1).astype(jnp.bfloat16)               # [1, S]
    h1 = jnp.dot(pooled, w1_ref[...], preferred_element_type=jnp.float32) + b1_ref[...]
    h1 = jnp.maximum(h1, 0.0)                                         # relu(fc1)
    out = jnp.dot(h1.astype(jnp.bfloat16), w2_ref[...],
                  preferred_element_type=jnp.float32) + b2_ref[...]   # [1, 2]
    o_ref[pl.ds(i, 1), :] = out


def classifier_head(last_hidden, fc1_wt, fc1_b, fc2_wt, fc2_b):
    b, s, h = last_hidden.shape
    hl = fc1_wt.shape[1]
    n_out = fc2_wt.shape[1]
    return pl.pallas_call(
        _head_kernel,
        out_shape=jax.ShapeDtypeStruct((b, n_out), jnp.float32),
        grid=(b,),
        in_specs=[pl.BlockSpec((1, s, h), lambda i: (i, 0, 0)),   # pipelined over batch
                  pl.BlockSpec((s, hl), lambda i: (0, 0)),
                  pl.BlockSpec((1, hl), lambda i: (0, 0)),
                  pl.BlockSpec((hl, n_out), lambda i: (0, 0)),
                  pl.BlockSpec((1, n_out), lambda i: (0, 0))],
        out_specs=pl.BlockSpec((b, n_out), lambda i: (0, 0)),     # resident output
        compiler_params=pltpu.CompilerParams(
            dimension_semantics=("arbitrary",),
            vmem_limit_bytes=_VMEM_LIMIT),
    )(last_hidden, fc1_wt, fc1_b.reshape(1, hl), fc2_wt, fc2_b.reshape(1, n_out))


# ----------------------------------------------------------------------------
# Parameter init (deterministic, synthetic) and model glue
# ----------------------------------------------------------------------------

def _fuse_qkv(wq, wk, wv, bq, bk, bv, num_heads, head_dim, heads_per_blk):
    """Pack QKV columns per head-group: [..., Qg | Kg | Vg, ...] (lane-aligned)."""
    gw = heads_per_blk * head_dim
    w_cols, b_cols = [], []
    for g in range(num_heads // heads_per_blk):
        sl = slice(g * gw, (g + 1) * gw)
        w_cols += [wq[:, sl], wk[:, sl], wv[:, sl]]
        b_cols += [bq[sl], bk[sl], bv[sl]]
    return (jnp.concatenate(w_cols, axis=1).astype(jnp.bfloat16),
            jnp.concatenate(b_cols, axis=0))


def init_params(key, cfg):
    vocab, hidden, heads, n_layers = cfg["vocab"], cfg["hidden"], cfg["heads"], cfg["layers"]
    inter, max_len, hl = cfg["intermediate"], cfg["max_len"], cfg["hidden_layer"]
    head_dim = hidden // heads
    hp = _heads_per_block(heads)

    keys = iter(jax.random.split(key, 8 + 8 * n_layers))
    nrm = lambda shape, std=0.02: jax.random.normal(next(keys), shape, jnp.float32) * std

    params = {
        "word_emb": nrm((vocab, hidden)),
        "pos_emb": nrm((max_len, hidden)),
        "type_emb": nrm((2, hidden)),
        "emb_ln_g": jnp.ones((hidden,), jnp.float32),
        "emb_ln_b": jnp.zeros((hidden,), jnp.float32),
        "layers": [],
    }
    for _ in range(n_layers):
        # matmul weights are stored pre-transposed [in, out] and cast to bf16
        wq, wk, wv = nrm((hidden, hidden)), nrm((hidden, hidden)), nrm((hidden, hidden))
        zb = jnp.zeros((hidden,), jnp.float32)
        wqkv_t, bqkv = _fuse_qkv(wq, wk, wv, zb, zb, zb, heads, head_dim, hp)
        params["layers"].append({
            "wqkv_t": wqkv_t,                                       # [H, 3H] head-group packed
            "bqkv": bqkv,
            "wo_t": nrm((hidden, hidden)).astype(jnp.bfloat16),
            "bo": jnp.zeros((hidden,), jnp.float32),
            "ln1_g": jnp.ones((hidden,), jnp.float32), "ln1_b": jnp.zeros((hidden,), jnp.float32),
            "w1_t": nrm((hidden, inter)).astype(jnp.bfloat16),
            "b1": jnp.zeros((inter,), jnp.float32),
            "w2_t": nrm((inter, hidden)).astype(jnp.bfloat16),
            "b2": jnp.zeros((hidden,), jnp.float32),
            "ln2_g": jnp.ones((hidden,), jnp.float32), "ln2_b": jnp.zeros((hidden,), jnp.float32),
        })
    # classifier head: kaiming_normal_ (fan_in, gain=sqrt(2)), zero biases
    params["fc1_wt"] = (jax.random.normal(next(keys), (max_len, hl), jnp.float32)
                        * math.sqrt(2.0 / max_len)).astype(jnp.bfloat16)
    params["fc1_b"] = jnp.zeros((hl,), jnp.float32)
    params["fc2_wt"] = (jax.random.normal(next(keys), (hl, 2), jnp.float32)
                        * math.sqrt(2.0 / hl)).astype(jnp.bfloat16)
    params["fc2_b"] = jnp.zeros((2,), jnp.float32)
    return params


def bert_encoder(params, input_ids, attention_mask, cfg):
    B, S = input_ids.shape
    H, nH = cfg["hidden"], cfg["heads"]
    Dh = H // nH

    # embeddings (table gather stays XLA glue), then Pallas layernorm (bf16 out)
    # TODO(synk): embedding gather not moved into Pallas (would need a DMA-gather kernel).
    emb = (params["word_emb"][input_ids]
           + params["pos_emb"][None, :S, :]
           + params["type_emb"][0][None, None, :])
    x2 = layernorm(emb.reshape(B * S, H), params["emb_ln_g"], params["emb_ln_b"])

    # [B, 1, S] mask consumed directly by the attention kernel (no per-head copy)
    mask_b1s = attention_mask.astype(jnp.float32).reshape(B, 1, S)

    for lyr in params["layers"]:
        qkv = dense(x2, lyr["wqkv_t"], lyr["bqkv"])                    # fused QKV  [B*S, 3H] bf16
        ctx = attention(qkv.reshape(B, S, 3 * H), mask_b1s, nH, Dh)    # [B, S, H]  bf16
        x2 = dense_add_layernorm(ctx.reshape(B * S, H), lyr["wo_t"], lyr["bo"],
                                 x2, lyr["ln1_g"], lyr["ln1_b"])       # attn out + res + LN
        ff = dense(x2, lyr["w1_t"], lyr["b1"], act="gelu")             # W1 + bias + GELU
        x2 = dense_add_layernorm(ff, lyr["w2_t"], lyr["b2"],
                                 x2, lyr["ln2_g"], lyr["ln2_b"])       # W2 + res + LN

    return x2.reshape(B, S, H)


def forward(params, input_ids, attention_mask, cfg):
    last_hidden_state = bert_encoder(params, input_ids, attention_mask, cfg)  # [B, S, H] bf16
    # dropout -> identity (eval); maxpool + fc1/relu + fc2 fused, gridded over batch
    return classifier_head(last_hidden_state,
                           params["fc1_wt"], params["fc1_b"],
                           params["fc2_wt"], params["fc2_b"])                 # [B, 2] f32


# ----------------------------------------------------------------------------

if __name__ == "__main__":
    cfg = dict(vocab=64, hidden=32, heads=2, layers=2, intermediate=64,
               max_len=8, hidden_layer=320)

    key = jax.random.PRNGKey(0)
    pkey, ikey = jax.random.split(key)
    params = init_params(pkey, cfg)

    B = 2
    input_ids = jax.random.randint(ikey, (B, cfg["max_len"]), 0, cfg["vocab"], dtype=jnp.int32)
    attention_mask = jnp.array([[1, 1, 1, 1, 1, 1, 1, 1],
                                [1, 1, 1, 1, 1, 1, 0, 0]], dtype=jnp.int32)

    fwd = jax.jit(lambda p, ids, m: forward(p, ids, m, cfg))
    logits = jax.block_until_ready(fwd(params, input_ids, attention_mask))
    assert logits.shape == (B, 2) and logits.dtype == jnp.float32
    print("KERNEL_OK")
</pallas_src>

<mosaic_0001>
module attributes {stable_mosaic.version = 11 : i64} {
  func.func @_layernorm_kernel(%arg0: i32, %arg1: memref<16x32xf32, #tpu.memory_space<vmem>>, %arg2: memref<1x32xf32, #tpu.memory_space<vmem>>, %arg3: memref<1x32xf32, #tpu.memory_space<vmem>>, %arg4: memref<16x32xbf16, #tpu.memory_space<vmem>>) attributes {dimension_semantics = [#tpu.dimension_semantics<parallel>], iteration_bounds = array<i64: 1>, scalar_prefetch = 0 : i64, scratch_operands = 0 : i64, tpu.core_type = #tpu.core_type<tc>, window_params = [{transform_indices = @transform_0, window_bounds = array<i64: 16, 32>}, {pipeline_mode = #tpu.pipeline_mode<synchronous>, transform_indices = @transform_1, window_bounds = array<i64: 1, 32>}, {pipeline_mode = #tpu.pipeline_mode<synchronous>, transform_indices = @transform_2, window_bounds = array<i64: 1, 32>}, {transform_indices = @transform_3, window_bounds = array<i64: 16, 32>}]} {
    %c0 = arith.constant 0 : index
    %c0_0 = arith.constant 0 : index
    %0 = vector.load %arg1[%c0, %c0_0] : memref<16x32xf32, #tpu.memory_space<vmem>>, vector<16x32xf32>
    %cst = arith.constant dense<0.000000e+00> : vector<16xf32>
    %1 = vector.multi_reduction <add>, %0, %cst [1] : vector<16x32xf32> to vector<16xf32>
    %2 = vector.shape_cast %1 : vector<16xf32> to vector<16x1xf32>
    %cst_1 = arith.constant 3.200000e+01 : f32
    %3 = vector.broadcast %cst_1 : f32 to vector<16x1xf32>
    %4 = arith.divf %2, %3 : vector<16x1xf32>
    %5 = vector.broadcast %4 : vector<16x1xf32> to vector<16x32xf32>
    %6 = arith.subf %0, %5 : vector<16x32xf32>
    %7 = vector.broadcast %4 : vector<16x1xf32> to vector<16x32xf32>
    %8 = arith.subf %0, %7 : vector<16x32xf32>
    %9 = arith.mulf %6, %8 : vector<16x32xf32>
    %cst_2 = arith.constant dense<0.000000e+00> : vector<16xf32>
    %10 = vector.multi_reduction <add>, %9, %cst_2 [1] : vector<16x32xf32> to vector<16xf32>
    %11 = vector.shape_cast %10 : vector<16xf32> to vector<16x1xf32>
    %cst_3 = arith.constant 3.200000e+01 : f32
    %12 = vector.broadcast %cst_3 : f32 to vector<16x1xf32>
    %13 = arith.divf %11, %12 : vector<16x1xf32>
    %14 = vector.broadcast %4 : vector<16x1xf32> to vector<16x32xf32>
    %15 = arith.subf %0, %14 : vector<16x32xf32>
    %cst_4 = arith.constant 9.99999996E-13 : f32
    %16 = vector.broadcast %cst_4 : f32 to vector<16x1xf32>
    %17 = arith.addf %13, %16 : vector<16x1xf32>
    %18 = math.rsqrt %17 : vector<16x1xf32>
    %19 = vector.broadcast %18 : vector<16x1xf32> to vector<16x32xf32>
    %20 = arith.mulf %15, %19 : vector<16x32xf32>
    %c0_5 = arith.constant 0 : index
    %c0_6 = arith.constant 0 : index
    %21 = vector.load %arg2[%c0_5, %c0_6] : memref<1x32xf32, #tpu.memory_space<vmem>>, vector<1x32xf32>
    %22 = vector.broadcast %21 : vector<1x32xf32> to vector<16x32xf32>
    %23 = arith.mulf %20, %22 : vector<16x32xf32>
    %c0_7 = arith.constant 0 : index
    %c0_8 = arith.constant 0 : index
    %24 = vector.load %arg3[%c0_7, %c0_8] : memref<1x32xf32, #tpu.memory_space<vmem>>, vector<1x32xf32>
    %25 = vector.broadcast %24 : vector<1x32xf32> to vector<16x32xf32>
    %26 = arith.addf %23, %25 : vector<16x32xf32>
    %27 = arith.truncf %26 : vector<16x32xf32> to vector<16x32xbf16>
    %c0_9 = arith.constant 0 : index
    %c0_10 = arith.constant 0 : index
    %28 = vector.load %arg4[%c0_9, %c0_10] : memref<16x32xbf16, #tpu.memory_space<vmem>>, vector<16x32xbf16>
    tpu.vector_store %arg4[%c0_9, %c0_10], %27 {strides = array<i32>} : memref<16x32xbf16, #tpu.memory_space<vmem>>, vector<16x32xbf16>,
    return
  }
  func.func @transform_0(%arg0: i32) -> (i32, i32) {
    %c0_i32 = arith.constant 0 : i32
    %c0_i32_0 = arith.constant 0 : i32
    return %arg0, %c0_i32 : i32, i32
  }
  func.func @transform_1(%arg0: i32) -> (i32, i32) {
    %c0_i32 = arith.constant 0 : i32
    %c0_i32_0 = arith.constant 0 : i32
    %c0_i32_1 = arith.constant 0 : i32
    return %c0_i32, %c0_i32_0 : i32, i32
  }
  func.func @transform_2(%arg0: i32) -> (i32, i32) {
    %c0_i32 = arith.constant 0 : i32
    %c0_i32_0 = arith.constant 0 : i32
    %c0_i32_1 = arith.constant 0 : i32
    return %c0_i32, %c0_i32_0 : i32, i32
  }
  func.func @transform_3(%arg0: i32) -> (i32, i32) {
    %c0_i32 = arith.constant 0 : i32
    %c0_i32_0 = arith.constant 0 : i32
    return %arg0, %c0_i32 : i32, i32
  }
}

module attributes {stable_mosaic.version = 11 : i64} {
  func.func @_dense_kernel(%arg0: i32, %arg1: memref<16x32xbf16, #tpu.memory_space<vmem>>, %arg2: memref<32x96xbf16, #tpu.memory_space<vmem>>, %arg3: memref<1x96xf32, #tpu.memory_space<vmem>>, %arg4: memref<16x96xbf16, #tpu.memory_space<vmem>>) attributes {dimension_semantics = [#tpu.dimension_semantics<parallel>], iteration_bounds = array<i64: 1>, scalar_prefetch = 0 : i64, scratch_operands = 0 : i64, tpu.core_type = #tpu.core_type<tc>, window_params = [{transform_indices = @transform_0, window_bounds = array<i64: 16, 32>}, {pipeline_mode = #tpu.pipeline_mode<synchronous>, transform_indices = @transform_1, window_bounds = array<i64: 32, 96>}, {pipeline_mode = #tpu.pipeline_mode<synchronous>, transform_indices = @transform_2, window_bounds = array<i64: 1, 96>}, {transform_indices = @transform_3, window_bounds = array<i64: 16, 96>}]} {
    %c0 = arith.constant 0 : index
    %c0_0 = arith.constant 0 : index
    %0 = vector.load %arg1[%c0, %c0_0] : memref<16x32xbf16, #tpu.memory_space<vmem>>, vector<16x32xbf16>
    %c0_1 = arith.constant 0 : index
    %c0_2 = arith.constant 0 : index
    %1 = vector.load %arg2[%c0_1, %c0_2] : memref<32x96xbf16, #tpu.memory_space<vmem>>, vector<32x96xbf16>
    %cst = arith.constant dense<0.000000e+00> : vector<16x96xf32>
    %2 = tpu.matmul %0, %1, %cst {dimension_numbers = #tpu.dot_dimension_numbers<[1], [0], [0], [1], [0, 0, 1, 1], [], []>} : vector<16x32xbf16>, vector<32x96xbf16>, vector<16x96xf32> -> vector<16x96xf32>
    %c0_3 = arith.constant 0 : index
    %c0_4 = arith.constant 0 : index
    %3 = vector.load %arg3[%c0_3, %c0_4] : memref<1x96xf32, #tpu.memory_space<vmem>>, vector<1x96xf32>
    %4 = vector.broadcast %3 : vector<1x96xf32> to vector<16x96xf32>
    %5 = arith.addf %2, %4 : vector<16x96xf32>
    %6 = arith.truncf %5 : vector<16x96xf32> to vector<16x96xbf16>
    %c0_5 = arith.constant 0 : index
    %c0_6 = arith.constant 0 : index
    %7 = vector.load %arg4[%c0_5, %c0_6] : memref<16x96xbf16, #tpu.memory_space<vmem>>, vector<16x96xbf16>
    tpu.vector_store %arg4[%c0_5, %c0_6], %6 {strides = array<i32>} : memref<16x96xbf16, #tpu.memory_space<vmem>>, vector<16x96xbf16>,
    return
  }
  func.func @transform_0(%arg0: i32) -> (i32, i32) {
    %c0_i32 = arith.constant 0 : i32
    %c0_i32_0 = arith.constant 0 : i32
    return %arg0, %c0_i32 : i32, i32
  }
  func.func @transform_1(%arg0: i32) -> (i32, i32) {
    %c0_i32 = arith.constant 0 : i32
    %c0_i32_0 = arith.constant 0 : i32
    %c0_i32_1 = arith.constant 0 : i32
    return %c0_i32, %c0_i32_0 : i32, i32
  }
  func.func @transform_2(%arg0: i32) -> (i32, i32) {
    %c0_i32 = arith.constant 0 : i32
    %c0_i32_0 = arith.constant 0 : i32
    %c0_i32_1 = arith.constant 0 : i32
    return %c0_i32, %c0_i32_0 : i32, i32
  }
  func.func @transform_3(%arg0: i32) -> (i32, i32) {
    %c0_i32 = arith.constant 0 : i32
    %c0_i32_0 = arith.constant 0 : i32
    return %arg0, %c0_i32 : i32, i32
  }
}

module attributes {stable_mosaic.version = 11 : i64} {
  func.func @_dense_add_ln_kernel(%arg0: i32, %arg1: memref<16x32xbf16, #tpu.memory_space<vmem>>, %arg2: memref<32x32xbf16, #tpu.memory_space<vmem>>, %arg3: memref<1x32xf32, #tpu.memory_space<vmem>>, %arg4: memref<16x32xbf16, #tpu.memory_space<vmem>>, %arg5: memref<1x32xf32, #tpu.memory_space<vmem>>, %arg6: memref<1x32xf32, #tpu.memory_space<vmem>>, %arg7: memref<16x32xbf16, #tpu.memory_space<vmem>>) attributes {dimension_semantics = [#tpu.dimension_semantics<parallel>], iteration_bounds = array<i64: 1>, scalar_prefetch = 0 : i64, scratch_operands = 0 : i64, tpu.core_type = #tpu.core_type<tc>, window_params = [{transform_indices = @transform_0, window_bounds = array<i64: 16, 32>}, {pipeline_mode = #tpu.pipeline_mode<synchronous>, transform_indices = @transform_1, window_bounds = array<i64: 32, 32>}, {pipeline_mode = #tpu.pipeline_mode<synchronous>, transform_indices = @transform_2, window_bounds = array<i64: 1, 32>}, {transform_indices = @transform_3, window_bounds = array<i64: 16, 32>}, {pipeline_mode = #tpu.pipeline_mode<synchronous>, transform_indices = @transform_4, window_bounds = array<i64: 1, 32>}, {pipeline_mode = #tpu.pipeline_mode<synchronous>, transform_indices = @transform_5, window_bounds = array<i64: 1, 32>}, {transform_indices = @transform_6, window_bounds = array<i64: 16, 32>}]} {
    %c0 = arith.constant 0 : index
    %c0_0 = arith.constant 0 : index
    %0 = vector.load %arg1[%c0, %c0_0] : memref<16x32xbf16, #tpu.memory_space<vmem>>, vector<16x32xbf16>
    %c0_1 = arith.constant 0 : index
    %c0_2 = arith.constant 0 : index
    %1 = vector.load %arg2[%c0_1, %c0_2] : memref<32x32xbf16, #tpu.memory_space<vmem>>, vector<32x32xbf16>
    %cst = arith.constant dense<0.000000e+00> : vector<16x32xf32>
    %2 = tpu.matmul %0, %1, %cst {dimension_numbers = #tpu.dot_dimension_numbers<[1], [0], [0], [1], [0, 0, 1, 1], [], []>} : vector<16x32xbf16>, vector<32x32xbf16>, vector<16x32xf32> -> vector<16x32xf32>
    %c0_3 = arith.constant 0 : index
    %c0_4 = arith.constant 0 : index
    %3 = vector.load %arg3[%c0_3, %c0_4] : memref<1x32xf32, #tpu.memory_space<vmem>>, vector<1x32xf32>
    %4 = vector.broadcast %3 : vector<1x32xf32> to vector<16x32xf32>
    %5 = arith.addf %2, %4 : vector<16x32xf32>
    %c0_5 = arith.constant 0 : index
    %c0_6 = arith.constant 0 : index
    %6 = vector.load %arg4[%c0_5, %c0_6] : memref<16x32xbf16, #tpu.memory_space<vmem>>, vector<16x32xbf16>
    %7 = arith.extf %6 : vector<16x32xbf16> to vector<16x32xf32>
    %8 = arith.addf %5, %7 : vector<16x32xf32>
    %cst_7 = arith.constant dense<0.000000e+00> : vector<16xf32>
    %9 = vector.multi_reduction <add>, %8, %cst_7 [1] : vector<16x32xf32> to vector<16xf32>
    %10 = vector.shape_cast %9 : vector<16xf32> to vector<16x1xf32>
    %cst_8 = arith.constant 3.200000e+01 : f32
    %11 = vector.broadcast %cst_8 : f32 to vector<16x1xf32>
    %12 = arith.divf %10, %11 : vector<16x1xf32>
    %13 = vector.broadcast %12 : vector<16x1xf32> to vector<16x32xf32>
    %14 = arith.subf %8, %13 : vector<16x32xf32>
    %15 = vector.broadcast %12 : vector<16x1xf32> to vector<16x32xf32>
    %16 = arith.subf %8, %15 : vector<16x32xf32>
    %17 = arith.mulf %14, %16 : vector<16x32xf32>
    %cst_9 = arith.constant dense<0.000000e+00> : vector<16xf32>
    %18 = vector.multi_reduction <add>, %17, %cst_9 [1] : vector<16x32xf32> to vector<16xf32>
    %19 = vector.shape_cast %18 : vector<16xf32> to vector<16x1xf32>
    %cst_10 = arith.constant 3.200000e+01 : f32
    %20 = vector.broadcast %cst_10 : f32 to vector<16x1xf32>
    %21 = arith.divf %19, %20 : vector<16x1xf32>
    %22 = vector.broadcast %12 : vector<16x1xf32> to vector<16x32xf32>
    %23 = arith.subf %8, %22 : vector<16x32xf32>
    %cst_11 = arith.constant 9.99999996E-13 : f32
    %24 = vector.broadcast %cst_11 : f32 to vector<16x1xf32>
    %25 = arith.addf %21, %24 : vector<16x1xf32>
    %26 = math.rsqrt %25 : vector<16x1xf32>
    %27 = vector.broadcast %26 : vector<16x1xf32> to vector<16x32xf32>
    %28 = arith.mulf %23, %27 : vector<16x32xf32>
    %c0_12 = arith.constant 0 : index
    %c0_13 = arith.constant 0 : index
    %29 = vector.load %arg5[%c0_12, %c0_13] : memref<1x32xf32, #tpu.memory_space<vmem>>, vector<1x32xf32>
    %30 = vector.broadcast %29 : vector<1x32xf32> to vector<16x32xf32>
    %31 = arith.mulf %28, %30 : vector<16x32xf32>
    %c0_14 = arith.constant 0 : index
    %c0_15 = arith.constant 0 : index
    %32 = vector.load %arg6[%c0_14, %c0_15] : memref<1x32xf32, #tpu.memory_space<vmem>>, vector<1x32xf32>
    %33 = vector.broadcast %32 : vector<1x32xf32> to vector<16x32xf32>
    %34 = arith.addf %31, %33 : vector<16x32xf32>
    %35 = arith.truncf %34 : vector<16x32xf32> to vector<16x32xbf16>
    %c0_16 = arith.constant 0 : index
    %c0_17 = arith.constant 0 : index
    %36 = vector.load %arg7[%c0_16, %c0_17] : memref<16x32xbf16, #tpu.memory_space<vmem>>, vector<16x32xbf16>
    tpu.vector_store %arg7[%c0_16, %c0_17], %35 {strides = array<i32>} : memref<16x32xbf16, #tpu.memory_space<vmem>>, vector<16x32xbf16>,
    return
  }
  func.func @transform_0(%arg0: i32) -> (i32, i32) {
    %c0_i32 = arith.constant 0 : i32
    %c0_i32_0 = arith.constant 0 : i32
    return %arg0, %c0_i32 : i32, i32
  }
  func.func @transform_1(%arg0: i32) -> (i32, i32) {
    %c0_i32 = arith.constant 0 : i32
    %c0_i32_0 = arith.constant 0 : i32
    %c0_i32_1 = arith.constant 0 : i32
    return %c0_i32, %c0_i32_0 : i32, i32
  }
  func.func @transform_2(%arg0: i32) -> (i32, i32) {
    %c0_i32 = arith.constant 0 : i32
    %c0_i32_0 = arith.constant 0 : i32
    %c0_i32_1 = arith.constant 0 : i32
    return %c0_i32, %c0_i32_0 : i32, i32
  }
  func.func @transform_3(%arg0: i32) -> (i32, i32) {
    %c0_i32 = arith.constant 0 : i32
    %c0_i32_0 = arith.constant 0 : i32
    return %arg0, %c0_i32 : i32, i32
  }
  func.func @transform_4(%arg0: i32) -> (i32, i32) {
    %c0_i32 = arith.constant 0 : i32
    %c0_i32_0 = arith.constant 0 : i32
    %c0_i32_1 = arith.constant 0 : i32
    return %c0_i32, %c0_i32_0 : i32, i32
  }
  func.func @transform_5(%arg0: i32) -> (i32, i32) {
    %c0_i32 = arith.constant 0 : i32
    %c0_i32_0 = arith.constant 0 : i32
    %c0_i32_1 = arith.constant 0 : i32
    return %c0_i32, %c0_i32_0 : i32, i32
  }
  func.func @transform_6(%arg0: i32) -> (i32, i32) {
    %c0_i32 = arith.constant 0 : i32
    %c0_i32_0 = arith.constant 0 : i32
    return %arg0, %c0_i32 : i32, i32
  }
}

module attributes {stable_mosaic.version = 11 : i64} {
  func.func @_attention_kernel(%arg0: i32, %arg1: i32, %arg2: memref<1x8x96xbf16, #tpu.memory_space<vmem>>, %arg3: memref<1x1x8xf32, #tpu.memory_space<vmem>>, %arg4: memref<1x8x32xbf16, #tpu.memory_space<vmem>>) attributes {dimension_semantics = [#tpu.dimension_semantics<parallel>, #tpu.dimension_semantics<parallel>], iteration_bounds = array<i64: 2, 1>, scalar_prefetch = 0 : i64, scratch_operands = 0 : i64, tpu.core_type = #tpu.core_type<tc>, window_params = [{transform_indices = @transform_0, window_bounds = array<i64: 1, 8, 96>}, {transform_indices = @transform_1, window_bounds = array<i64: 1, 1, 8>}, {transform_indices = @transform_2, window_bounds = array<i64: 1, 8, 32>}]} {
    %c0 = arith.constant 0 : index
    %c0_0 = arith.constant 0 : index
    %c0_1 = arith.constant 0 : index
    %0 = vector.load %arg3[%c0, %c0_0, %c0_1] : memref<1x1x8xf32, #tpu.memory_space<vmem>>, vector<1x1x8xf32>
    %1 = vector.shape_cast %0 : vector<1x1x8xf32> to vector<1x8xf32>
    %cst = arith.constant 1.000000e+00 : f32
    %2 = vector.broadcast %cst : f32 to vector<1x8xf32>
    %3 = arith.subf %2, %1 : vector<1x8xf32>
    %cst_2 = arith.constant -1.000000e+04 : f32
    %4 = vector.broadcast %cst_2 : f32 to vector<1x8xf32>
    %5 = arith.mulf %3, %4 : vector<1x8xf32>
    %c0_3 = arith.constant 0 : index
    %c0_4 = arith.constant 0 : index
    %c0_5 = arith.constant 0 : index
    %6 = vector.load %arg2[%c0_3, %c0_4, %c0_5] : memref<1x8x96xbf16, #tpu.memory_space<vmem>>, vector<1x8x16xbf16>
    %7 = vector.shape_cast %6 : vector<1x8x16xbf16> to vector<8x16xbf16>
    %c0_6 = arith.constant 0 : index
    %c0_7 = arith.constant 0 : index
    %c32 = arith.constant 32 : index
    %8 = vector.load %arg2[%c0_6, %c0_7, %c32] : memref<1x8x96xbf16, #tpu.memory_space<vmem>>, vector<1x8x16xbf16>
    %9 = vector.shape_cast %8 : vector<1x8x16xbf16> to vector<8x16xbf16>
    %c0_8 = arith.constant 0 : index
    %c0_9 = arith.constant 0 : index
    %c64 = arith.constant 64 : index
    %10 = vector.load %arg2[%c0_8, %c0_9, %c64] : memref<1x8x96xbf16, #tpu.memory_space<vmem>>, vector<1x8x16xbf16>
    %11 = vector.shape_cast %10 : vector<1x8x16xbf16> to vector<8x16xbf16>
    %cst_10 = arith.constant dense<0.000000e+00> : vector<8x8xf32>
    %12 = tpu.matmul %7, %9, %cst_10 {dimension_numbers = #tpu.dot_dimension_numbers<[1], [1], [0], [0], [0, 0, 1, 0], [], []>} : vector<8x16xbf16>, vector<8x16xbf16>, vector<8x8xf32> -> vector<8x8xf32>
    %cst_11 = arith.constant 2.500000e-01 : f32
    %13 = vector.broadcast %cst_11 : f32 to vector<8x8xf32>
    %14 = arith.mulf %12, %13 : vector<8x8xf32>
    %15 = vector.broadcast %5 : vector<1x8xf32> to vector<8x8xf32>
    %16 = arith.addf %14, %15 : vector<8x8xf32>
    %cst_12 = arith.constant dense<0xFF800000> : vector<8xf32>
    %17 = vector.multi_reduction <maximumf>, %16, %cst_12 [1] : vector<8x8xf32> to vector<8xf32>
    %18 = vector.shape_cast %17 : vector<8xf32> to vector<8x1xf32>
    %19 = vector.broadcast %18 : vector<8x1xf32> to vector<8x8xf32>
    %20 = arith.subf %16, %19 : vector<8x8xf32>
    %21 = math.exp %20 : vector<8x8xf32>
    %cst_13 = arith.constant dense<0.000000e+00> : vector<8xf32>
    %22 = vector.multi_reduction <add>, %21, %cst_13 [1] : vector<8x8xf32> to vector<8xf32>
    %23 = vector.shape_cast %22 : vector<8xf32> to vector<8x1xf32>
    %24 = tpu.reciprocal %23 {approx = true} : vector<8x1xf32> -> vector<8x1xf32>
    %25 = vector.broadcast %24 : vector<8x1xf32> to vector<8x8xf32>
    %26 = arith.mulf %21, %25 : vector<8x8xf32>
    %27 = arith.truncf %26 : vector<8x8xf32> to vector<8x8xbf16>
    %cst_14 = arith.constant dense<0.000000e+00> : vector<8x16xf32>
    %28 = tpu.matmul %27, %11, %cst_14 {dimension_numbers = #tpu.dot_dimension_numbers<[1], [0], [0], [1], [0, 0, 1, 1], [], []>} : vector<8x8xbf16>, vector<8x16xbf16>, vector<8x16xf32> -> vector<8x16xf32>
    %c0_15 = arith.constant 0 : index
    %c0_16 = arith.constant 0 : index
    %c16 = arith.constant 16 : index
    %29 = vector.load %arg2[%c0_15, %c0_16, %c16] : memref<1x8x96xbf16, #tpu.memory_space<vmem>>, vector<1x8x16xbf16>
    %30 = vector.shape_cast %29 : vector<1x8x16xbf16> to vector<8x16xbf16>
    %c0_17 = arith.constant 0 : index
    %c0_18 = arith.constant 0 : index
    %c48 = arith.constant 48 : index
    %31 = vector.load %arg2[%c0_17, %c0_18, %c48] : memref<1x8x96xbf16, #tpu.memory_space<vmem>>, vector<1x8x16xbf16>
    %32 = vector.shape_cast %31 : vector<1x8x16xbf16> to vector<8x16xbf16>
    %c0_19 = arith.constant 0 : index
    %c0_20 = arith.constant 0 : index
    %c80 = arith.constant 80 : index
    %33 = vector.load %arg2[%c0_19, %c0_20, %c80] : memref<1x8x96xbf16, #tpu.memory_space<vmem>>, vector<1x8x16xbf16>
    %34 = vector.shape_cast %33 : vector<1x8x16xbf16> to vector<8x16xbf16>
    %cst_21 = arith.constant dense<0.000000e+00> : vector<8x8xf32>
    %35 = tpu.matmul %30, %32, %cst_21 {dimension_numbers = #tpu.dot_dimension_numbers<[1], [1], [0], [0], [0, 0, 1, 0], [], []>} : vector<8x16xbf16>, vector<8x16xbf16>, vector<8x8xf32> -> vector<8x8xf32>
    %cst_22 = arith.constant 2.500000e-01 : f32
    %36 = vector.broadcast %cst_22 : f32 to vector<8x8xf32>
    %37 = arith.mulf %35, %36 : vector<8x8xf32>
    %38 = vector.broadcast %5 : vector<1x8xf32> to vector<8x8xf32>
    %39 = arith.addf %37, %38 : vector<8x8xf32>
    %cst_23 = arith.constant dense<0xFF800000> : vector<8xf32>
    %40 = vector.multi_reduction <maximumf>, %39, %cst_23 [1] : vector<8x8xf32> to vector<8xf32>
    %41 = vector.shape_cast %40 : vector<8xf32> to vector<8x1xf32>
    %42 = vector.broadcast %41 : vector<8x1xf32> to vector<8x8xf32>
    %43 = arith.subf %39, %42 : vector<8x8xf32>
    %44 = math.exp %43 : vector<8x8xf32>
    %cst_24 = arith.constant dense<0.000000e+00> : vector<8xf32>
    %45 = vector.multi_reduction <add>, %44, %cst_24 [1] : vector<8x8xf32> to vector<8xf32>
    %46 = vector.shape_cast %45 : vector<8xf32> to vector<8x1xf32>
    %47 = tpu.reciprocal %46 {approx = true} : vector<8x1xf32> -> vector<8x1xf32>
    %48 = vector.broadcast %47 : vector<8x1xf32> to vector<8x8xf32>
    %49 = arith.mulf %44, %48 : vector<8x8xf32>
    %50 = arith.truncf %49 : vector<8x8xf32> to vector<8x8xbf16>
    %cst_25 = arith.constant dense<0.000000e+00> : vector<8x16xf32>
    %51 = tpu.matmul %50, %34, %cst_25 {dimension_numbers = #tpu.dot_dimension_numbers<[1], [0], [0], [1], [0, 0, 1, 1], [], []>} : vector<8x8xbf16>, vector<8x16xbf16>, vector<8x16xf32> -> vector<8x16xf32>
    %52 = tpu.concatenate %28, %51 in 1 : vector<8x16xf32>, vector<8x16xf32> -> vector<8x32xf32>
    %53 = arith.truncf %52 : vector<8x32xf32> to vector<8x32xbf16>
    %c0_26 = arith.constant 0 : index
    %c0_27 = arith.constant 0 : index
    %c0_28 = arith.constant 0 : index
    %54 = vector.load %arg4[%c0_26, %c0_27, %c0_28] : memref<1x8x32xbf16, #tpu.memory_space<vmem>>, vector<1x8x32xbf16>
    %55 = vector.shape_cast %54 : vector<1x8x32xbf16> to vector<8x32xbf16>
    %56 = vector.shape_cast %53 : vector<8x32xbf16> to vector<1x8x32xbf16>
    tpu.vector_store %arg4[%c0_26, %c0_27, %c0_28], %56 {strides = array<i32>} : memref<1x8x32xbf16, #tpu.memory_space<vmem>>, vector<1x8x32xbf16>,
    return
  }
  func.func @transform_0(%arg0: i32, %arg1: i32) -> (i32, i32, i32) {
    %c0_i32 = arith.constant 0 : i32
    %c0_i32_0 = arith.constant 0 : i32
    return %arg0, %c0_i32, %arg1 : i32, i32, i32
  }
  func.func @transform_1(%arg0: i32, %arg1: i32) -> (i32, i32, i32) {
    %c0_i32 = arith.constant 0 : i32
    %c0_i32_0 = arith.constant 0 : i32
    %c0_i32_1 = arith.constant 0 : i32
    return %arg0, %c0_i32, %c0_i32_0 : i32, i32, i32
  }
  func.func @transform_2(%arg0: i32, %arg1: i32) -> (i32, i32, i32) {
    %c0_i32 = arith.constant 0 : i32
    %c0_i32_0 = arith.constant 0 : i32
    return %arg0, %c0_i32, %arg1 : i32, i32, i32
  }
}

module attributes {stable_mosaic.version = 11 : i64} {
  func.func @_dense_kernel(%arg0: i32, %arg1: memref<16x32xbf16, #tpu.memory_space<vmem>>, %arg2: memref<32x64xbf16, #tpu.memory_space<vmem>>, %arg3: memref<1x64xf32, #tpu.memory_space<vmem>>, %arg4: memref<16x64xbf16, #tpu.memory_space<vmem>>) attributes {dimension_semantics = [#tpu.dimension_semantics<parallel>], iteration_bounds = array<i64: 1>, scalar_prefetch = 0 : i64, scratch_operands = 0 : i64, tpu.core_type = #tpu.core_type<tc>, window_params = [{transform_indices = @transform_0, window_bounds = array<i64: 16, 32>}, {pipeline_mode = #tpu.pipeline_mode<synchronous>, transform_indices = @transform_1, window_bounds = array<i64: 32, 64>}, {pipeline_mode = #tpu.pipeline_mode<synchronous>, transform_indices = @transform_2, window_bounds = array<i64: 1, 64>}, {transform_indices = @transform_3, window_bounds = array<i64: 16, 64>}]} {
    %c0 = arith.constant 0 : index
    %c0_0 = arith.constant 0 : index
    %0 = vector.load %arg1[%c0, %c0_0] : memref<16x32xbf16, #tpu.memory_space<vmem>>, vector<16x32xbf16>
    %c0_1 = arith.constant 0 : index
    %c0_2 = arith.constant 0 : index
    %1 = vector.load %arg2[%c0_1, %c0_2] : memref<32x64xbf16, #tpu.memory_space<vmem>>, vector<32x64xbf16>
    %cst = arith.constant dense<0.000000e+00> : vector<16x64xf32>
    %2 = tpu.matmul %0, %1, %cst {dimension_numbers = #tpu.dot_dimension_numbers<[1], [0], [0], [1], [0, 0, 1, 1], [], []>} : vector<16x32xbf16>, vector<32x64xbf16>, vector<16x64xf32> -> vector<16x64xf32>
    %c0_3 = arith.constant 0 : index
    %c0_4 = arith.constant 0 : index
    %3 = vector.load %arg3[%c0_3, %c0_4] : memref<1x64xf32, #tpu.memory_space<vmem>>, vector<1x64xf32>
    %4 = vector.broadcast %3 : vector<1x64xf32> to vector<16x64xf32>
    %5 = arith.addf %2, %4 : vector<16x64xf32>
    %cst_5 = arith.constant 5.000000e-01 : f32
    %6 = vector.broadcast %cst_5 : f32 to vector<16x64xf32>
    %7 = arith.mulf %6, %5 : vector<16x64xf32>
    %cst_6 = arith.constant 4.471500e-02 : f32
    %8 = vector.broadcast %cst_6 : f32 to vector<16x64xf32>
    %9 = arith.mulf %8, %5 : vector<16x64xf32>
    %10 = arith.mulf %9, %5 : vector<16x64xf32>
    %11 = arith.mulf %10, %5 : vector<16x64xf32>
    %12 = arith.addf %5, %11 : vector<16x64xf32>
    %cst_7 = arith.constant 0.797884583 : f32
    %13 = vector.broadcast %cst_7 : f32 to vector<16x64xf32>
    %14 = arith.mulf %13, %12 : vector<16x64xf32>
    %15 = math.tanh %14 : vector<16x64xf32>
    %cst_8 = arith.constant 1.000000e+00 : f32
    %16 = vector.broadcast %cst_8 : f32 to vector<16x64xf32>
    %17 = arith.addf %16, %15 : vector<16x64xf32>
    %18 = arith.mulf %7, %17 : vector<16x64xf32>
    %19 = arith.truncf %18 : vector<16x64xf32> to vector<16x64xbf16>
    %c0_9 = arith.constant 0 : index
    %c0_10 = arith.constant 0 : index
    %20 = vector.load %arg4[%c0_9, %c0_10] : memref<16x64xbf16, #tpu.memory_space<vmem>>, vector<16x64xbf16>
    tpu.vector_store %arg4[%c0_9, %c0_10], %19 {strides = array<i32>} : memref<16x64xbf16, #tpu.memory_space<vmem>>, vector<16x64xbf16>,
    return
  }
  func.func @transform_0(%arg0: i32) -> (i32, i32) {
    %c0_i32 = arith.constant 0 : i32
    %c0_i32_0 = arith.constant 0 : i32
    return %arg0, %c0_i32 : i32, i32
  }
  func.func @transform_1(%arg0: i32) -> (i32, i32) {
    %c0_i32 = arith.constant 0 : i32
    %c0_i32_0 = arith.constant 0 : i32
    %c0_i32_1 = arith.constant 0 : i32
    return %c0_i32, %c0_i32_0 : i32, i32
  }
  func.func @transform_2(%arg0: i32) -> (i32, i32) {
    %c0_i32 = arith.constant 0 : i32
    %c0_i32_0 = arith.constant 0 : i32
    %c0_i32_1 = arith.constant 0 : i32
    return %c0_i32, %c0_i32_0 : i32, i32
  }
  func.func @transform_3(%arg0: i32) -> (i32, i32) {
    %c0_i32 = arith.constant 0 : i32
    %c0_i32_0 = arith.constant 0 : i32
    return %arg0, %c0_i32 : i32, i32
  }
}

module attributes {stable_mosaic.version = 11 : i64} {
  func.func @_dense_add_ln_kernel(%arg0: i32, %arg1: memref<16x64xbf16, #tpu.memory_space<vmem>>, %arg2: memref<64x32xbf16, #tpu.memory_space<vmem>>, %arg3: memref<1x32xf32, #tpu.memory_space<vmem>>, %arg4: memref<16x32xbf16, #tpu.memory_space<vmem>>, %arg5: memref<1x32xf32, #tpu.memory_space<vmem>>, %arg6: memref<1x32xf32, #tpu.memory_space<vmem>>, %arg7: memref<16x32xbf16, #tpu.memory_space<vmem>>) attributes {dimension_semantics = [#tpu.dimension_semantics<parallel>], iteration_bounds = array<i64: 1>, scalar_prefetch = 0 : i64, scratch_operands = 0 : i64, tpu.core_type = #tpu.core_type<tc>, window_params = [{transform_indices = @transform_0, window_bounds = array<i64: 16, 64>}, {pipeline_mode = #tpu.pipeline_mode<synchronous>, transform_indices = @transform_1, window_bounds = array<i64: 64, 32>}, {pipeline_mode = #tpu.pipeline_mode<synchronous>, transform_indices = @transform_2, window_bounds = array<i64: 1, 32>}, {transform_indices = @transform_3, window_bounds = array<i64: 16, 32>}, {pipeline_mode = #tpu.pipeline_mode<synchronous>, transform_indices = @transform_4, window_bounds = array<i64: 1, 32>}, {pipeline_mode = #tpu.pipeline_mode<synchronous>, transform_indices = @transform_5, window_bounds = array<i64: 1, 32>}, {transform_indices = @transform_6, window_bounds = array<i64: 16, 32>}]} {
    %c0 = arith.constant 0 : index
    %c0_0 = arith.constant 0 : index
    %0 = vector.load %arg1[%c0, %c0_0] : memref<16x64xbf16, #tpu.memory_space<vmem>>, vector<16x64xbf16>
    %c0_1 = arith.constant 0 : index
    %c0_2 = arith.constant 0 : index
    %1 = vector.load %arg2[%c0_1, %c0_2] : memref<64x32xbf16, #tpu.memory_space<vmem>>, vector<64x32xbf16>
    %cst = arith.constant dense<0.000000e+00> : vector<16x32xf32>
    %2 = tpu.matmul %0, %1, %cst {dimension_numbers = #tpu.dot_dimension_numbers<[1], [0], [0], [1], [0, 0, 1, 1], [], []>} : vector<16x64xbf16>, vector<64x32xbf16>, vector<16x32xf32> -> vector<16x32xf32>
    %c0_3 = arith.constant 0 : index
    %c0_4 = arith.constant 0 : index
    %3 = vector.load %arg3[%c0_3, %c0_4] : memref<1x32xf32, #tpu.memory_space<vmem>>, vector<1x32xf32>
    %4 = vector.broadcast %3 : vector<1x32xf32> to vector<16x32xf32>
    %5 = arith.addf %2, %4 : vector<16x32xf32>
    %c0_5 = arith.constant 0 : index
    %c0_6 = arith.constant 0 : index
    %6 = vector.load %arg4[%c0_5, %c0_6] : memref<16x32xbf16, #tpu.memory_space<vmem>>, vector<16x32xbf16>
    %7 = arith.extf %6 : vector<16x32xbf16> to vector<16x32xf32>
    %8 = arith.addf %5, %7 : vector<16x32xf32>
    %cst_7 = arith.constant dense<0.000000e+00> : vector<16xf32>
    %9 = vector.multi_reduction <add>, %8, %cst_7 [1] : vector<16x32xf32> to vector<16xf32>
    %10 = vector.shape_cast %9 : vector<16xf32> to vector<16x1xf32>
    %cst_8 = arith.constant 3.200000e+01 : f32
    %11 = vector.broadcast %cst_8 : f32 to vector<16x1xf32>
    %12 = arith.divf %10, %11 : vector<16x1xf32>
    %13 = vector.broadcast %12 : vector<16x1xf32> to vector<16x32xf32>
    %14 = arith.subf %8, %13 : vector<16x32xf32>
    %15 = vector.broadcast %12 : vector<16x1xf32> to vector<16x32xf32>
    %16 = arith.subf %8, %15 : vector<16x32xf32>
    %17 = arith.mulf %14, %16 : vector<16x32xf32>
    %cst_9 = arith.constant dense<0.000000e+00> : vector<16xf32>
    %18 = vector.multi_reduction <add>, %17, %cst_9 [1] : vector<16x32xf32> to vector<16xf32>
    %19 = vector.shape_cast %18 : vector<16xf32> to vector<16x1xf32>
    %cst_10 = arith.constant 3.200000e+01 : f32
    %20 = vector.broadcast %cst_10 : f32 to vector<16x1xf32>
    %21 = arith.divf %19, %20 : vector<16x1xf32>
    %22 = vector.broadcast %12 : vector<16x1xf32> to vector<16x32xf32>
    %23 = arith.subf %8, %22 : vector<16x32xf32>
    %cst_11 = arith.constant 9.99999996E-13 : f32
    %24 = vector.broadcast %cst_11 : f32 to vector<16x1xf32>
    %25 = arith.addf %21, %24 : vector<16x1xf32>
    %26 = math.rsqrt %25 : vector<16x1xf32>
    %27 = vector.broadcast %26 : vector<16x1xf32> to vector<16x32xf32>
    %28 = arith.mulf %23, %27 : vector<16x32xf32>
    %c0_12 = arith.constant 0 : index
    %c0_13 = arith.constant 0 : index
    %29 = vector.load %arg5[%c0_12, %c0_13] : memref<1x32xf32, #tpu.memory_space<vmem>>, vector<1x32xf32>
    %30 = vector.broadcast %29 : vector<1x32xf32> to vector<16x32xf32>
    %31 = arith.mulf %28, %30 : vector<16x32xf32>
    %c0_14 = arith.constant 0 : index
    %c0_15 = arith.constant 0 : index
    %32 = vector.load %arg6[%c0_14, %c0_15] : memref<1x32xf32, #tpu.memory_space<vmem>>, vector<1x32xf32>
    %33 = vector.broadcast %32 : vector<1x32xf32> to vector<16x32xf32>
    %34 = arith.addf %31, %33 : vector<16x32xf32>
    %35 = arith.truncf %34 : vector<16x32xf32> to vector<16x32xbf16>
    %c0_16 = arith.constant 0 : index
    %c0_17 = arith.constant 0 : index
    %36 = vector.load %arg7[%c0_16, %c0_17] : memref<16x32xbf16, #tpu.memory_space<vmem>>, vector<16x32xbf16>
    tpu.vector_store %arg7[%c0_16, %c0_17], %35 {strides = array<i32>} : memref<16x32xbf16, #tpu.memory_space<vmem>>, vector<16x32xbf16>,
    return
  }
  func.func @transform_0(%arg0: i32) -> (i32, i32) {
    %c0_i32 = arith.constant 0 : i32
    %c0_i32_0 = arith.constant 0 : i32
    return %arg0, %c0_i32 : i32, i32
  }
  func.func @transform_1(%arg0: i32) -> (i32, i32) {
    %c0_i32 = arith.constant 0 : i32
    %c0_i32_0 = arith.constant 0 : i32
    %c0_i32_1 = arith.constant 0 : i32
    return %c0_i32, %c0_i32_0 : i32, i32
  }
  func.func @transform_2(%arg0: i32) -> (i32, i32) {
    %c0_i32 = arith.constant 0 : i32
    %c0_i32_0 = arith.constant 0 : i32
    %c0_i32_1 = arith.constant 0 : i32
    return %c0_i32, %c0_i32_0 : i32, i32
  }
  func.func @transform_3(%arg0: i32) -> (i32, i32) {
    %c0_i32 = arith.constant 0 : i32
    %c0_i32_0 = arith.constant 0 : i32
    return %arg0, %c0_i32 : i32, i32
  }
  func.func @transform_4(%arg0: i32) -> (i32, i32) {
    %c0_i32 = arith.constant 0 : i32
    %c0_i32_0 = arith.constant 0 : i32
    %c0_i32_1 = arith.constant 0 : i32
    return %c0_i32, %c0_i32_0 : i32, i32
  }
  func.func @transform_5(%arg0: i32) -> (i32, i32) {
    %c0_i32 = arith.constant 0 : i32
    %c0_i32_0 = arith.constant 0 : i32
    %c0_i32_1 = arith.constant 0 : i32
    return %c0_i32, %c0_i32_0 : i32, i32
  }
  func.func @transform_6(%arg0: i32) -> (i32, i32) {
    %c0_i32 = arith.constant 0 : i32
    %c0_i32_0 = arith.constant 0 : i32
    return %arg0, %c0_i32 : i32, i32
  }
}

module attributes {stable_mosaic.version = 11 : i64} {
  func.func @_head_kernel(%arg0: i32, %arg1: memref<1x8x32xbf16, #tpu.memory_space<vmem>>, %arg2: memref<8x320xbf16, #tpu.memory_space<vmem>>, %arg3: memref<1x320xf32, #tpu.memory_space<vmem>>, %arg4: memref<320x2xbf16, #tpu.memory_space<vmem>>, %arg5: memref<1x2xf32, #tpu.memory_space<vmem>>, %arg6: memref<2x2xf32, #tpu.memory_space<vmem>>) attributes {dimension_semantics = [#tpu.dimension_semantics<arbitrary>], iteration_bounds = array<i64: 2>, scalar_prefetch = 0 : i64, scratch_operands = 0 : i64, tpu.core_type = #tpu.core_type<tc>, window_params = [{transform_indices = @transform_0, window_bounds = array<i64: 1, 8, 32>}, {pipeline_mode = #tpu.pipeline_mode<synchronous>, transform_indices = @transform_1, window_bounds = array<i64: 8, 320>}, {pipeline_mode = #tpu.pipeline_mode<synchronous>, transform_indices = @transform_2, window_bounds = array<i64: 1, 320>}, {pipeline_mode = #tpu.pipeline_mode<synchronous>, transform_indices = @transform_3, window_bounds = array<i64: 320, 2>}, {pipeline_mode = #tpu.pipeline_mode<synchronous>, transform_indices = @transform_4, window_bounds = array<i64: 1, 2>}, {pipeline_mode = #tpu.pipeline_mode<synchronous>, transform_indices = @transform_5, window_bounds = array<i64: 2, 2>}]} {
    %c0 = arith.constant 0 : index
    %c0_0 = arith.constant 0 : index
    %c0_1 = arith.constant 0 : index
    %0 = vector.load %arg1[%c0, %c0_0, %c0_1] : memref<1x8x32xbf16, #tpu.memory_space<vmem>>, vector<1x8x32xbf16>
    %1 = vector.shape_cast %0 : vector<1x8x32xbf16> to vector<8x32xbf16>
    %2 = arith.extf %1 : vector<8x32xbf16> to vector<8x32xf32>
    %cst = arith.constant dense<0xFF800000> : vector<8xf32>
    %3 = vector.multi_reduction <maximumf>, %2, %cst [1] : vector<8x32xf32> to vector<8xf32>
    %4 = vector.shape_cast %3 : vector<8xf32> to vector<1x8xf32>
    %5 = arith.truncf %4 : vector<1x8xf32> to vector<1x8xbf16>
    %c0_2 = arith.constant 0 : index
    %c0_3 = arith.constant 0 : index
    %6 = vector.load %arg2[%c0_2, %c0_3] : memref<8x320xbf16, #tpu.memory_space<vmem>>, vector<8x320xbf16>
    %cst_4 = arith.constant dense<0.000000e+00> : vector<1x320xf32>
    %7 = tpu.matmul %5, %6, %cst_4 {dimension_numbers = #tpu.dot_dimension_numbers<[1], [0], [0], [1], [0, 0, 1, 1], [], []>} : vector<1x8xbf16>, vector<8x320xbf16>, vector<1x320xf32> -> vector<1x320xf32>
    %c0_5 = arith.constant 0 : index
    %c0_6 = arith.constant 0 : index
    %8 = vector.load %arg3[%c0_5, %c0_6] : memref<1x320xf32, #tpu.memory_space<vmem>>, vector<1x320xf32>
    %9 = arith.addf %7, %8 : vector<1x320xf32>
    %cst_7 = arith.constant 0.000000e+00 : f32
    %10 = vector.broadcast %cst_7 : f32 to vector<1x320xf32>
    %11 = arith.maximumf %9, %10 : vector<1x320xf32>
    %12 = arith.truncf %11 : vector<1x320xf32> to vector<1x320xbf16>
    %c0_8 = arith.constant 0 : index
    %c0_9 = arith.constant 0 : index
    %13 = vector.load %arg4[%c0_8, %c0_9] : memref<320x2xbf16, #tpu.memory_space<vmem>>, vector<320x2xbf16>
    %cst_10 = arith.constant dense<0.000000e+00> : vector<1x2xf32>
    %14 = tpu.matmul %12, %13, %cst_10 {dimension_numbers = #tpu.dot_dimension_numbers<[1], [0], [0], [1], [0, 0, 1, 1], [], []>} : vector<1x320xbf16>, vector<320x2xbf16>, vector<1x2xf32> -> vector<1x2xf32>
    %c0_11 = arith.constant 0 : index
    %c0_12 = arith.constant 0 : index
    %15 = vector.load %arg5[%c0_11, %c0_12] : memref<1x2xf32, #tpu.memory_space<vmem>>, vector<1x2xf32>
    %16 = arith.addf %14, %15 : vector<1x2xf32>
    %17 = arith.index_cast %arg0 : i32 to index
    %c0_13 = arith.constant 0 : index
    %18 = vector.load %arg6[%17, %c0_13] : memref<2x2xf32, #tpu.memory_space<vmem>>, vector<1x2xf32>
    tpu.vector_store %arg6[%17, %c0_13], %16 {strides = array<i32>} : memref<2x2xf32, #tpu.memory_space<vmem>>, vector<1x2xf32>,
    return
  }
  func.func @transform_0(%arg0: i32) -> (i32, i32, i32) {
    %c0_i32 = arith.constant 0 : i32
    %c0_i32_0 = arith.constant 0 : i32
    %c0_i32_1 = arith.constant 0 : i32
    return %arg0, %c0_i32, %c0_i32_0 : i32, i32, i32
  }
  func.func @transform_1(%arg0: i32) -> (i32, i32) {
    %c0_i32 = arith.constant 0 : i32
    %c0_i32_0 = arith.constant 0 : i32
    %c0_i32_1 = arith.constant 0 : i32
    return %c0_i32, %c0_i32_0 : i32, i32
  }
  func.func @transform_2(%arg0: i32) -> (i32, i32) {
    %c0_i32 = arith.constant 0 : i32
    %c0_i32_0 = arith.constant 0 : i32
    %c0_i32_1 = arith.constant 0 : i32
    return %c0_i32, %c0_i32_0 : i32, i32
  }
  func.func @transform_3(%arg0: i32) -> (i32, i32) {
    %c0_i32 = arith.constant 0 : i32
    %c0_i32_0 = arith.constant 0 : i32
    %c0_i32_1 = arith.constant 0 : i32
    return %c0_i32, %c0_i32_0 : i32, i32
  }
  func.func @transform_4(%arg0: i32) -> (i32, i32) {
    %c0_i32 = arith.constant 0 : i32
    %c0_i32_0 = arith.constant 0 : i32
    %c0_i32_1 = arith.constant 0 : i32
    return %c0_i32, %c0_i32_0 : i32, i32
  }
  func.func @transform_5(%arg0: i32) -> (i32, i32) {
    %c0_i32 = arith.constant 0 : i32
    %c0_i32_0 = arith.constant 0 : i32
    %c0_i32_1 = arith.constant 0 : i32
    return %c0_i32, %c0_i32_0 : i32, i32
  }
}

</mosaic_0001>

<bundles_post_ra>
// kernel: _lambda_.13
= control target key start
LH: loop header
LB: loop body
LE: loop exit
PB: predicated region body
PF: predicated region fallthrough
CT: control target
= control target key end

     0   :  { %vm42_vm0 = vcmask 261120   ;;  %vm62_vm1 = vcmask 781312   ;;  %s124_s1 = inlined_call_operand.vmem [shape: bf16[32,96], index: 1, kind: input, shape index: {}]   ;;  %s125_s2 = inlined_call_operand.vmem [shape: f32[1,96], index: 2, kind: input, shape index: {}]   ;;  %s126_s0 = inlined_call_operand.vmem [shape: bf16[16,32], index: 0, kind: input, shape index: {}]   ;;  %s127_s3 = inlined_call_operand.vmem [shape: bf16[16,96], index: 3, kind: output, shape index: {}]  }
   0x1   :  { %v84_v0 = vld [vmem:[%s124_s1 + $0x8] sm:$0xff]  ;;  %v83_v1 = vld [vmem:[%s124_s1] sm:$0xff] }
   0x2   :  { %52 = vmatpush.bf16.msra.mxu0 %v84_v0  ;;  %v82_v2 = vld [vmem:[%s126_s0] sm:$0xff] }
   0x3   :  { %v85_v3 = vld [vmem:[%s125_s2] ss:$0 sm:$0xff] }
   0x6   :  { %53 = vmatpush.bf16.msra.mxu0 %v83_v1 }
   0x9   :  { %81 = vmatmul.msk.bf16.vlgmr.msra.gmra.mxu0 %vm42_vm0, %v82_v2 }
  0x86   :  { %v55_v4 = vpop.f32.mrf.mxu0 }
  0x87   :  { %v56_v5 = vadd.f32 %v85_v3, %v55_v4 }
  0x89   :  { %v60_v6 = vpack.c.bf16 %v56_v5, %v56_v5 }
  0x8b   :  { %63 = vst.msk [vmem:[%s127_s3] sm:$0xf] %vm62_vm1, %v60_v6 }
  0x8e   :  { %v57_v7 = vpop.f32.mrf.mxu0 }
  0x8f   :  { %v58_v8 = vadd.f32 %v85_v3, %v57_v7 }
  0x91   :  { %v61_v9 = vpack.c.bf16 %v58_v8, %v58_v8 }
  0x93   :  { %64 = vst.msk [vmem:[%s127_s3 + $0x4] sm:$0xf] %vm62_vm1, %v61_v9 }

// kernel: _lambda_.12
= control target key start
LH: loop header
LB: loop body
LE: loop exit
PB: predicated region body
PF: predicated region fallthrough
CT: control target
= control target key end

     0   :  { %vm16_vm0 = vcmask 261120   ;;  %v98_v4 = vmov 32.0   ;;  %vm82_vm6 = vcmask 257024   ;;  %s141_s0 = inlined_call_operand.vmem [shape: f32[16,32], index: 0, kind: input, shape index: {}]   ;;  %s142_s1 = inlined_call_operand.vmem [shape: f32[1,32], index: 1, kind: input, shape index: {}]   ;;  %s143_s2 = inlined_call_operand.vmem [shape: f32[1,32], index: 2, kind: input, shape index: {}]   ;;  %s144_s3 = inlined_call_operand.vmem [shape: bf16[16,32], index: 3, kind: output, shape index: {}]  }
   0x1   :  { %v14_v0 = vld [vmem:[%s141_s0] sm:$0xff]  ;;  %v15_v2 = vld [vmem:[%s141_s0 + $0x8] sm:$0xff]  ;;  %92 = vrcp.f32 %v98_v4 }
   0x2   :  { %v17_v1 = vsel %vm16_vm0, %v14_v0, 0.0  ;;  %v20_v3 = vsel %vm16_vm0, %v15_v2, 0.0  ;;  %v90_v35 = vld [vmem:[%s142_s1] ss:$0 sm:$0xff] }
   0x3   :  { %18 = vadd.xlane.f32.xlu0 %v17_v1  ;;  %v91_v38 = vld [vmem:[%s143_s2] ss:$0 sm:$0xff] }
   0x7   :  { %v93_v5 = vpop.eup %92 }
   0x8   :  { %v24_v6 = vmul.f32 32.0, %v93_v5  ;;  %vm28_vm1 = vweird.f32 %v93_v5 }
   0xa   :  { %v25_v7 = vsub.f32 1.0, %v24_v6 }
   0xb   :  { %21 = vadd.xlane.f32.xlu0 %v20_v3 }
   0xc   :  { %v26_v8 = vmul.f32 %v93_v5, %v25_v7 }
   0xe   :  { %v27_v9 = vadd.f32 %v93_v5, %v26_v8 }
  0x10   :  { %v29_v10 = vsel %vm28_vm1, %v93_v5, %v27_v9 }
  0x76   :  { %v19_v11 = vpop.xlane.xlu0 %18 }
  0x77   :  { %v30_v12 = vmul.f32 %v29_v10, %v19_v11 }
  0x79   :  { %v32_v13 = vsub.f32 %v14_v0, %v30_v12 }
  0x7b   :  { %v34_v14 = vmul.f32 %v32_v13, %v32_v13 }
  0x7d   :  { %v36_v15 = vsel %vm16_vm0, %v34_v14, 0.0 }
  0x7e   :  { %37 = vadd.xlane.f32.xlu1 %v36_v15  ;;  %v22_v16 = vpop.xlane.xlu0 %21 }
  0x7f   :  { %v31_v17 = vmul.f32 %v29_v10, %v22_v16 }
  0x81   :  { %v33_v18 = vsub.f32 %v15_v2, %v31_v17 }
  0x83   :  { %v35_v19 = vmul.f32 %v33_v18, %v33_v18 }
  0x85   :  { %v39_v20 = vsel %vm16_vm0, %v35_v19, 0.0 }
  0x86   :  { %40 = vadd.xlane.f32.xlu1 %v39_v20 }
  0xf1   :  { %v38_v21 = vpop.xlane.xlu1 %37 }
  0xf2   :  { %v42_v22 = vmul.f32 %v38_v21, %v29_v10 }
  0xf4   :  { %v44_v23 = vadd.f32 1e-12, %v42_v22 }
  0xf6   :  { %94 = vrsqrt.f32 %v44_v23  ;;  %vm52_vm3 = vweird.f32 %v44_v23 }
  0xf9   :  { %v41_v24 = vpop.xlane.xlu1 %40 }
  0xfa   :  { %v43_v25 = vmul.f32 %v41_v24, %v29_v10 }
  0xfc   :  { %v95_v26 = vpop.eup %94  ;;  %v45_v27 = vadd.f32 1e-12, %v43_v25 }
  0xfd   :  { %v47_v28 = vmul.f32 %v95_v26, %v44_v23  ;;  %vm53_vm2 = vweird.f32 %v95_v26 }
  0xfe   :  { %96 = vrsqrt.f32 %v45_v27  ;;  %vm54_vm4 = vmor %vm52_vm3, %vm53_vm2  ;;  %vm62_vm7 = vweird.f32 %v45_v27 }
  0xff   :  { %v48_v29 = vmul.f32 %v95_v26, %v47_v28 }
 0x101   :  { %v49_v30 = vmul.f32 0.5, %v48_v29 }
 0x103   :  { %v50_v31 = vsub.f32 1.5, %v49_v30 }
 0x104   :  { %v97_v32 = vpop.eup %96 }
 0x105   :  { %v51_v33 = vmul.f32 %v95_v26, %v50_v31  ;;  %v57_v34 = vmul.f32 %v97_v32, %v45_v27  ;;  %vm63_vm5 = vweird.f32 %v97_v32 }
 0x106   :  { %vm64_vm8 = vmor %vm62_vm7, %vm63_vm5 }
 0x107   :  { %v55_v36 = vsel %vm54_vm4, %v95_v26, %v51_v33  ;;  %v58_v37 = vmul.f32 %v97_v32, %v57_v34 }
 0x108   :  { %v66_v39 = vmul.f32 %v55_v36, %v32_v13 }
 0x109   :  { %v59_v40 = vmul.f32 0.5, %v58_v37 }
 0x10a   :  { %v72_v41 = vmul.f32 %v90_v35, %v66_v39 }
 0x10b   :  { %v60_v42 = vsub.f32 1.5, %v59_v40 }
 0x10c   :  { %v78_v43 = vadd.f32 %v91_v38, %v72_v41 }
 0x10d   :  { %v61_v44 = vmul.f32 %v97_v32, %v60_v42 }
 0x10e   :  { %v80_v45 = vpack.c.bf16 %v78_v43, %v78_v43 }
 0x10f   :  { %v65_v46 = vsel %vm64_vm8, %v97_v32, %v61_v44 }
 0x110   :  { %83 = vst.msk [vmem:[%s144_s3] sm:$0xf] %vm82_vm6, %v80_v45  ;;  %v67_v47 = vmul.f32 %v65_v46, %v33_v18 }
 0x112   :  { %v73_v48 = vmul.f32 %v90_v35, %v67_v47 }
 0x114   :  { %v79_v49 = vadd.f32 %v91_v38, %v73_v48 }
 0x116   :  { %v81_v50 = vpack.c.bf16 %v79_v49, %v79_v49 }
 0x118   :  { %84 = vst.msk [vmem:[%s144_s3 + $0x4] sm:$0xf] %vm82_vm6, %v81_v50 }

// kernel: _lambda_.15
= control target key start
LH: loop header
LB: loop body
LE: loop exit
PB: predicated region body
PF: predicated region fallthrough
CT: control target
= control target key end

     0   :  { %vm51_vm0 = vcmask 261120   ;;  %v177_v15 = vmov 32.0   ;;  %vm140_vm6 = vcmask 257024   ;;  %s245_s1 = inlined_call_operand.vmem [shape: bf16[32,32], index: 1, kind: input, shape index: {}]   ;;  %s246_s2 = inlined_call_operand.vmem [shape: f32[1,32], index: 2, kind: input, shape index: {}]   ;;  %s247_s0 = inlined_call_operand.vmem [shape: bf16[16,32], index: 0, kind: input, shape index: {}]   ;;  %s248_s3 = inlined_call_operand.vmem [shape: bf16[16,32], index: 3, kind: input, shape index: {}]   ;;  %s249_s4 = inlined_call_operand.vmem [shape: f32[1,32], index: 4, kind: input, shape index: {}]   ;;  %s250_s5 = inlined_call_operand.vmem [shape: f32[1,32], index: 5, kind: input, shape index: {}]   ;;  %s251_s6 = inlined_call_operand.vmem [shape: bf16[16,32], index: 6, kind: output, shape index: {}]  }
   0x1   :  { %v162_v0 = vld [vmem:[%s245_s1 + $0x8] sm:$0xff]  ;;  %v161_v1 = vld [vmem:[%s245_s1] sm:$0xff]  ;;  %171 = vrcp.f32 %v177_v15 }
   0x2   :  { %61 = vmatpush.bf16.msra.mxu0 %v162_v0  ;;  %v160_v2 = vld [vmem:[%s247_s0] sm:$0xff] }
   0x3   :  { %v164_v3 = vld [vmem:[%s248_s3] sm:$0xff]  }
   0x4   :  { %v168_v4 = vld [vmem:[%s246_s2] ss:$0 sm:$0xff]  ;;  %v165_v5 = vunpack.c.l.bf16 %v164_v3  ;;  %v166_v10 = vunpack.c.h.bf16 %v164_v3 }
   0x5   :  { %v169_v46 = vld [vmem:[%s249_s4] ss:$0 sm:$0xff] }
   0x6   :  { %62 = vmatpush.bf16.msra.mxu0 %v161_v1  ;;  %v170_v49 = vld [vmem:[%s250_s5] ss:$0 sm:$0xff] }
   0x7   :  { %v172_v16 = vpop.eup %171 }
   0x8   :  { %v82_v17 = vmul.f32 32.0, %v172_v16  ;;  %vm86_vm1 = vweird.f32 %v172_v16 }
   0x9   :  { %159 = vmatmul.msk.bf16.vlgmr.msra.gmra.mxu0 %vm51_vm0, %v160_v2 }
   0xa   :  { %v83_v18 = vsub.f32 1.0, %v82_v17 }
   0xc   :  { %v84_v19 = vmul.f32 %v172_v16, %v83_v18 }
   0xe   :  { %v85_v20 = vadd.f32 %v172_v16, %v84_v19 }
  0x10   :  { %v87_v21 = vsel %vm86_vm1, %v172_v16, %v85_v20 }
  0x86   :  { %v64_v6 = vpop.f32.mrf.mxu0 }
  0x87   :  { %v65_v7 = vadd.f32 %v168_v4, %v64_v6 }
  0x89   :  { %v73_v8 = vadd.f32 %v165_v5, %v65_v7 }
  0x8b   :  { %v75_v9 = vsel %vm51_vm0, %v73_v8, 0.0 }
  0x8c   :  { %76 = vadd.xlane.f32.xlu0 %v75_v9 }
  0x8e   :  { %v66_v11 = vpop.f32.mrf.mxu0 }
  0x8f   :  { %v67_v12 = vadd.f32 %v168_v4, %v66_v11 }
  0x91   :  { %v74_v13 = vadd.f32 %v166_v10, %v67_v12 }
  0x93   :  { %v78_v14 = vsel %vm51_vm0, %v74_v13, 0.0 }
  0x94   :  { %79 = vadd.xlane.f32.xlu0 %v78_v14 }
  0xff   :  { %v77_v22 = vpop.xlane.xlu0 %76 }
 0x100   :  { %v88_v23 = vmul.f32 %v87_v21, %v77_v22 }
 0x102   :  { %v90_v24 = vsub.f32 %v73_v8, %v88_v23 }
 0x104   :  { %v92_v25 = vmul.f32 %v90_v24, %v90_v24 }
 0x106   :  { %v94_v26 = vsel %vm51_vm0, %v92_v25, 0.0 }
 0x107   :  { %95 = vadd.xlane.f32.xlu1 %v94_v26  ;;  %v80_v27 = vpop.xlane.xlu0 %79 }
 0x108   :  { %v89_v28 = vmul.f32 %v87_v21, %v80_v27 }
 0x10a   :  { %v91_v29 = vsub.f32 %v74_v13, %v89_v28 }
 0x10c   :  { %v93_v30 = vmul.f32 %v91_v29, %v91_v29 }
 0x10e   :  { %v97_v31 = vsel %vm51_vm0, %v93_v30, 0.0 }
 0x10f   :  { %98 = vadd.xlane.f32.xlu1 %v97_v31 }
 0x17a   :  { %v96_v32 = vpop.xlane.xlu1 %95 }
 0x17b   :  { %v100_v33 = vmul.f32 %v96_v32, %v87_v21 }
 0x17d   :  { %v102_v34 = vadd.f32 1e-12, %v100_v33 }
 0x17f   :  { %173 = vrsqrt.f32 %v102_v34  ;;  %vm110_vm3 = vweird.f32 %v102_v34 }
 0x182   :  { %v99_v35 = vpop.xlane.xlu1 %98 }
 0x183   :  { %v101_v36 = vmul.f32 %v99_v35, %v87_v21 }
 0x185   :  { %v174_v37 = vpop.eup %173  ;;  %v103_v38 = vadd.f32 1e-12, %v101_v36 }
 0x186   :  { %v105_v39 = vmul.f32 %v174_v37, %v102_v34  ;;  %vm111_vm2 = vweird.f32 %v174_v37 }
 0x187   :  { %175 = vrsqrt.f32 %v103_v38  ;;  %vm112_vm4 = vmor %vm110_vm3, %vm111_vm2  ;;  %vm120_vm7 = vweird.f32 %v103_v38 }
 0x188   :  { %v106_v40 = vmul.f32 %v174_v37, %v105_v39 }
 0x18a   :  { %v107_v41 = vmul.f32 0.5, %v106_v40 }
 0x18c   :  { %v108_v42 = vsub.f32 1.5, %v107_v41 }
 0x18d   :  { %v176_v43 = vpop.eup %175 }
 0x18e   :  { %v109_v44 = vmul.f32 %v174_v37, %v108_v42  ;;  %v115_v45 = vmul.f32 %v176_v43, %v103_v38  ;;  %vm121_vm5 = vweird.f32 %v176_v43 }
 0x18f   :  { %vm122_vm8 = vmor %vm120_vm7, %vm121_vm5 }
 0x190   :  { %v113_v47 = vsel %vm112_vm4, %v174_v37, %v109_v44  ;;  %v116_v48 = vmul.f32 %v176_v43, %v115_v45 }
 0x191   :  { %v124_v50 = vmul.f32 %v113_v47, %v90_v24 }
 0x192   :  { %v117_v51 = vmul.f32 0.5, %v116_v48 }
 0x193   :  { %v130_v52 = vmul.f32 %v169_v46, %v124_v50 }
 0x194   :  { %v118_v53 = vsub.f32 1.5, %v117_v51 }
 0x195   :  { %v136_v54 = vadd.f32 %v170_v49, %v130_v52 }
 0x196   :  { %v119_v55 = vmul.f32 %v176_v43, %v118_v53 }
 0x197   :  { %v138_v56 = vpack.c.bf16 %v136_v54, %v136_v54 }
 0x198   :  { %v123_v57 = vsel %vm122_vm8, %v176_v43, %v119_v55 }
 0x199   :  { %141 = vst.msk [vmem:[%s251_s6] sm:$0xf] %vm140_vm6, %v138_v56  ;;  %v125_v58 = vmul.f32 %v123_v57, %v91_v29 }
 0x19b   :  { %v131_v59 = vmul.f32 %v169_v46, %v125_v58 }
 0x19d   :  { %v137_v60 = vadd.f32 %v170_v49, %v131_v59 }
 0x19f   :  { %v139_v61 = vpack.c.bf16 %v137_v60, %v137_v60 }
 0x1a1   :  { %142 = vst.msk [vmem:[%s251_s6 + $0x4] sm:$0xf] %vm140_vm6, %v139_v61 }

// kernel: _lambda_.14
= control target key start
LH: loop header
LB: loop body
LE: loop exit
PB: predicated region body
PF: predicated region fallthrough
CT: control target
= control target key end

     0   :  { %s499_s9 = smov 0   ;;  %s501_s10 = smov 0   ;;  %s554_s0 = inlined_call_operand.vmem [shape: bf16[2,8,96], index: 0, kind: input, shape index: {}]   ;;  %s555_s1 = inlined_call_operand.vmem [shape: f32[2,1,8], index: 1, kind: input, shape index: {}]   ;;  %s556_s2 = inlined_call_operand.vmem [shape: bf16[2,8,32], index: 2, kind: output, shape index: {}]  }
   0x1   :  { %s503_s11 = smov 0  }
   0x2 LB: > { %s24_s12 = sadd.s32 1, %s472_s10  ;;  %p407_p0 = scmp.ge.s32.totalorder %s476_s11, 1  ;;  %s476_s11 = sphi %s503_s11, %s12_s11   ;;  %s472_s10 = sphi %s501_s10, %s558_s10   ;;  %s468_s9 = sphi %s499_s9, %s557_s9  }
   0x3   : > { %p26_p1 = scmp.ge.s32.totalorder %s24_s12, 2  ;;  %p138_p2 = scmp.lt.s32.totalorder %s476_s11, 3 }
   0x5   : > { %s560_s12 = smov (%p26_p1, %s24_s12), 0  ;;  %p139_p3 = pnand %p407_p0, %p138_p2 }
   0x6   : > { %p167_p4 = scmp.lt.s32.totalorder (!%p139_p3), %s468_s9, 1  ;;  %s478_s17 = smov (!%p139_p3), 96  }
   0x7   : > { %142 = sbr.rel (%p139_p3) target bundleno = 762 (0x2fa), region = 28  ;;  %s479_s18 = smov (!%p139_p3), 80  }
   0x8   : > { %s480_s19 = smov (!%p139_p3), 112   ;;  %s481_s23 = smov (!%p139_p3), 48  }
   0x9   : > { %s482_s24 = smov (!%p139_p3), 64   ;;  %s483_s25 = smov (!%p139_p3), 16  }
   0xc   : > { %s562_s9 = smov (!%p167_p4, %s468_s9), 1  ;;  %vm194_vm0 = vcmask 130048   ;;  %vm219_vm1 = vcmask 64512   ;;  %vm237_vm2 = vcmask 1043456   ;;  %vm318_vm3 = vcmask 257024  }
   0xd   : > { %s408_s13 = sshll.u32 %s562_s9, 2  ;;  %s176_s22 = scalar_lea.vmem %s555_s1, %s562_s9 }
   0xe   : > { %s173_s16 = scalar_lea.vmem %s554_s0, %s408_s13  ;;  %v185_v8 = vld [vmem:[%s176_s22] sm:$0x1]  ;;  %s183_s28 = scalar_lea.vmem %s556_s2, %s408_s13 }
   0xf   : > { %v188_v0 = vld [vmem:[%s173_s16] sm:$0xf]  ;;  %v186_v9 = vsub.f32 1.0, %v185_v8 }
  0x10   : > { %v190_v1 = vunpack.c.l.b16 %v188_v0 }
  0x11   : > { %v187_v10 = vmul.f32 -10000.0, %v186_v9 }
  0x12   : > { %v191_v2 = vpack.c.b16 %v190_v1, %v190_v1 }
  0x13   : > { %v216_v11 = vperm.slane %v187_v10, 0 }
  0x14   : > { %192 = vrot.lane.b32.xlu1 %v191_v2, %s478_s17  ;;  %256 = vrot.lane.b32.xlu0 %v191_v2, %s479_s18 }
  0x1c   : > { %254 = vrot.lane.b32.xlu0 %v191_v2, %s480_s19 }
  0x24   : > { %291 = vrot.lane.b32.xlu0 %v191_v2, %s481_s23 }
  0x2c   : > { %232 = vrot.lane.b32.xlu0 %v191_v2, %s482_s24 }
  0x86   : > { %v193_v3 = vpop.permute.xlu1 %192  ;;  %v257_v4 = vpop.permute.xlu0 %256 }
  0x87   : > { %v199_v5 = vsel %vm194_vm0, %v193_v3, 0  ;;  %v262_v6 = vsel %vm194_vm0, %v257_v4, 0 }
  0x88   : > { %208 = vmatpush.bf16.xpose.msra.mxu0 %v199_v5  ;;  %271 = vmatpush.bf16.xpose.msra.mxu2 %v262_v6 }
  0x8e   : > { %v255_v7 = vpop.permute.xlu0 %254 }
  0x8f   : > { %410 = vmatmul.msk.bf16.vlgmr.msra.gmra.mxu0 %vm194_vm0, %v188_v0  ;;  %412 = vmatmul.msk.bf16.vlgmr.msra.gmra.mxu2 %vm194_vm0, %v255_v7 }
  0x96   : > { %v292_v32 = vpop.permute.xlu0 %291 }
  0x97   : > { %v297_v33 = vsel %vm237_vm2, %v292_v32, 0 }
  0x98   : > { %306 = vmatpush.bf16.msra.mxu3 %v297_v33 }
  0x9e   : > { %v233_v34 = vpop.permute.xlu0 %232 }
  0x9f   : > { %v239_v35 = vsel %vm237_vm2, %v233_v34, 0 }
  0xa0   : > { %248 = vmatpush.bf16.msra.mxu1 %v239_v35 }
 0x10c   : > { %v210_v12 = vpop.f32.mrf.mxu0 }
 0x10d   : > { %v214_v13 = vmul.f32 0.25, %v210_v12 }
 0x10f   : > { %v218_v14 = vadd.f32 %v216_v11, %v214_v13 }
 0x111   : > { %v220_v15 = vsel %vm219_vm1, %v218_v14, -inf }
 0x112   : > { %221 = vmax.xlane.f32.xlu2 %v220_v15  ;;  %v273_v16 = vpop.f32.mrf.mxu2 }
 0x113   : > { %v277_v17 = vmul.f32 0.25, %v273_v16 }
 0x114   : > { %v212_v18 = vpop.f32.mrf.mxu0 }
 0x115   : > { %v278_v19 = vadd.f32 %v277_v17, %v216_v11 }
 0x117   : > { %v279_v20 = vsel %vm219_vm1, %v278_v19, -inf }
 0x118   : > { %280 = vmax.xlane.f32.xlu1 %v279_v20 }
 0x11a   : > { %v275_v21 = vpop.f32.mrf.mxu2 }
 0x185   : > { %v222_v22 = vpop.xlane.xlu2 %221 }
 0x186   : > { %v223_v25 = vsub.f32 %v218_v14, %v222_v22 }
 0x188   : > { %v224_v27 = vmul.f32 1.442695, %v223_v25 }
 0x18b   : > { %v281_v23 = vpop.xlane.xlu1 %280 }
 0x18c   : > { %v282_v24 = vsub.f32 %v278_v19, %v281_v23 }
 0x18e   : > { %v283_v26 = vmul.f32 1.442695, %v282_v24 }
 0x190   : > { %446 = vpow2.f32 %v283_v26 }
 0x191   : > { %448 = vpow2.f32 %v224_v27 }
 0x196   : > { %v447_v28 = vpop.eup %446 }
 0x197   : > { %v285_v29 = vsel %vm219_vm1, %v447_v28, 0.0  ;;  %v449_v30 = vpop.eup %448 }
 0x198   : > { %286 = vadd.xlane.f32.xlu2 %v285_v29  ;;  %v226_v31 = vsel %vm219_vm1, %v449_v30, 0.0 }
 0x1a0   : > { %227 = vadd.xlane.f32.xlu2 %v226_v31 }
 0x20b   : > { %v287_v36 = vpop.xlane.xlu2 %286 }
 0x20c   : > { %450 = vrcp.f32 %v287_v36 }
 0x212   : > { %v451_v37 = vpop.eup %450 }
 0x213   : > { %v228_v38 = vpop.xlane.xlu2 %227  ;;  %v289_v39 = vmul.f32 %v451_v37, %v447_v28 }
 0x214   : > { %452 = vrcp.f32 %v228_v38 }
 0x215   : > { %v290_v40 = vpack.c.bf16 %v289_v39, %v289_v39 }
 0x217   : > { %413 = vmatmul.msk.bf16.vlgmr.msra.gmra.mxu3 %vm219_vm1, %v290_v40 }
 0x21a   : > { %v453_v41 = vpop.eup %452 }
 0x21b   : > { %v230_v42 = vmul.f32 %v453_v41, %v449_v30 }
 0x21d   : > { %v231_v43 = vpack.c.bf16 %v230_v42, %v230_v42 }
 0x21f   : > { %411 = vmatmul.msk.bf16.vlgmr.msra.gmra.mxu1 %vm219_vm1, %v231_v43 }
 0x29a   : > { %v308_v44 = vpop.f32.mrf.mxu3 }
 0x29b   : > { %313 = vrot.lane.b32.xlu2 %v308_v44, %s483_s25 }
 0x29c   : > { %v250_v45 = vpop.f32.mrf.mxu1 }
 0x2a2   : > { %v310_v46 = vpop.f32.mrf.mxu3 }
 0x2a4   : > { %v252_v47 = vpop.f32.mrf.mxu1 }
 0x2f5   : > { %v314_v48 = vpop.permute.xlu2 %313 }
 0x2f6   : > { %v316_v49 = vsel %vm194_vm0, %v250_v45, %v314_v48 }
 0x2f7   : > { %v317_v50 = vpack.c.bf16 %v316_v49, %v316_v49 }
 0x2f9   : > { %319 = vst.msk [vmem:[%s183_s28] sm:$0xf] %vm318_vm3, %v317_v50 }
 0x2fa PF: > { %s12_s11 = sadd.s32 1, %s476_s11   ;;  %s557_s9 = smov %s472_s10 }
 0x2fb   : > { %p9_p5 = scmp.ge.s32.totalorder %s12_s11, 4   ;;  %s558_s10 = smov %s560_s12 }
 0x2fd   :  { %11 = sbr.rel (!%p9_p5) target bundleno = 2 (0x2), region = 61 }

// kernel: _lambda_.16
= control target key start
LH: loop header
LB: loop body
LE: loop exit
PB: predicated region body
PF: predicated region fallthrough
CT: control target
= control target key end

     0   :  { %vm42_vm0 = vcmask 261120   ;;  %vm80_vm1 = vcmask 519168   ;;  %s146_s1 = inlined_call_operand.vmem [shape: bf16[32,64], index: 1, kind: input, shape index: {}]   ;;  %s147_s2 = inlined_call_operand.vmem [shape: f32[1,64], index: 2, kind: input, shape index: {}]   ;;  %s148_s0 = inlined_call_operand.vmem [shape: bf16[16,32], index: 0, kind: input, shape index: {}]   ;;  %s149_s3 = inlined_call_operand.vmem [shape: bf16[16,64], index: 3, kind: output, shape index: {}]  }
   0x1   :  { %v102_v0 = vld [vmem:[%s146_s1 + $0x8] sm:$0xff]  ;;  %v101_v1 = vld [vmem:[%s146_s1] sm:$0xff] }
   0x2   :  { %52 = vmatpush.bf16.msra.mxu0 %v102_v0  ;;  %v100_v2 = vld [vmem:[%s148_s0] sm:$0xff] }
   0x3   :  { %v103_v3 = vld [vmem:[%s147_s2] ss:$0 sm:$0xff] }
   0x6   :  { %53 = vmatpush.bf16.msra.mxu0 %v101_v1 }
   0x9   :  { %99 = vmatmul.msk.bf16.vlgmr.msra.gmra.mxu0 %vm42_vm0, %v100_v2 }
  0x86   :  { %v55_v4 = vpop.f32.mrf.mxu0 }
  0x87   :  { %v56_v5 = vadd.f32 %v103_v3, %v55_v4 }
  0x89   :  { %v62_v6 = vmul.f32 0.044715, %v56_v5  ;;  %v60_v19 = vmul.f32 0.5, %v56_v5 }
  0x8b   :  { %v64_v7 = vmul.f32 %v62_v6, %v56_v5 }
  0x8d   :  { %v66_v8 = vmul.f32 %v64_v7, %v56_v5 }
  0x8e   :  { %v57_v9 = vpop.f32.mrf.mxu0 }
  0x8f   :  { %v68_v10 = vadd.f32 %v66_v8, %v56_v5  ;;  %v58_v11 = vadd.f32 %v103_v3, %v57_v9 }
  0x91   :  { %v70_v12 = vmul.f32 0.7978846, %v68_v10  ;;  %v63_v13 = vmul.f32 0.044715, %v58_v11  ;;  %v61_v24 = vmul.f32 0.5, %v58_v11 }
  0x93   :  { %104 = vtanh.f32 %v70_v12  ;;  %v65_v14 = vmul.f32 %v63_v13, %v58_v11 }
  0x95   :  { %v67_v15 = vmul.f32 %v65_v14, %v58_v11 }
  0x97   :  { %v69_v16 = vadd.f32 %v67_v15, %v58_v11 }
  0x99   :  { %v105_v17 = vpop.eup %104  ;;  %v71_v18 = vmul.f32 0.7978846, %v69_v16 }
  0x9a   :  { %v74_v20 = vadd.f32 1.0, %v105_v17 }
  0x9b   :  { %106 = vtanh.f32 %v71_v18 }
  0x9c   :  { %v76_v21 = vmul.f32 %v74_v20, %v60_v19 }
  0x9e   :  { %v78_v22 = vpack.c.bf16 %v76_v21, %v76_v21 }
  0xa0   :  { %81 = vst.msk [vmem:[%s149_s3] sm:$0xf] %vm80_vm1, %v78_v22 }
  0xa1   :  { %v107_v23 = vpop.eup %106 }
  0xa2   :  { %v75_v25 = vadd.f32 1.0, %v107_v23 }
  0xa4   :  { %v77_v26 = vmul.f32 %v75_v25, %v61_v24 }
  0xa6   :  { %v79_v27 = vpack.c.bf16 %v77_v26, %v77_v26 }
  0xa8   :  { %82 = vst.msk [vmem:[%s149_s3 + $0x4] sm:$0xf] %vm80_vm1, %v79_v27 }

// kernel: _lambda_.17
= control target key start
LH: loop header
LB: loop body
LE: loop exit
PB: predicated region body
PF: predicated region fallthrough
CT: control target
= control target key end

     0   :  { %vm67_vm0 = vcmask 523264   ;;  %vm91_vm1 = vcmask 261120   ;;  %v204_v17 = vmov 32.0   ;;  %vm157_vm7 = vcmask 257024   ;;  %s277_s1 = inlined_call_operand.vmem [shape: bf16[64,32], index: 1, kind: input, shape index: {}]   ;;  %s278_s2 = inlined_call_operand.vmem [shape: f32[1,32], index: 2, kind: input, shape index: {}]   ;;  %s279_s0 = inlined_call_operand.vmem [shape: bf16[16,64], index: 0, kind: input, shape index: {}]   ;;  %s280_s3 = inlined_call_operand.vmem [shape: bf16[16,32], index: 3, kind: input, shape index: {}]   ;;  %s281_s4 = inlined_call_operand.vmem [shape: f32[1,32], index: 4, kind: input, shape index: {}]   ;;  %s282_s5 = inlined_call_operand.vmem [shape: f32[1,32], index: 5, kind: input, shape index: {}]   ;;  %s283_s6 = inlined_call_operand.vmem [shape: bf16[16,32], index: 6, kind: output, shape index: {}]  }
   0x1   :  { %v189_v0 = vld [vmem:[%s277_s1 + $0x18] sm:$0xff]  ;;  %v188_v1 = vld [vmem:[%s277_s1 + $0x10] sm:$0xff]  ;;  %v187_v2 = vld [vmem:[%s277_s1 + $0x8] sm:$0xff]  ;;  %198 = vrcp.f32 %v204_v17 }
   0x2   :  { %75 = vmatpush.bf16.msra.mxu0 %v189_v0  ;;  %v186_v3 = vld [vmem:[%s277_s1] sm:$0xff] }
   0x3   :  { %v185_v4 = vld [vmem:[%s279_s0] sm:$0xff] }
   0x4   :  { %v191_v5 = vld [vmem:[%s280_s3] sm:$0xff]  }
   0x5   :  { %v195_v6 = vld [vmem:[%s278_s2] ss:$0 sm:$0xff]  ;;  %v192_v7 = vunpack.c.l.bf16 %v191_v5  ;;  %v193_v12 = vunpack.c.h.bf16 %v191_v5 }
   0x6   :  { %76 = vmatpush.bf16.msra.mxu0 %v188_v1  ;;  %v196_v48 = vld [vmem:[%s281_s4] ss:$0 sm:$0xff] }
   0x7   :  { %v199_v18 = vpop.eup %198  ;;  %v197_v51 = vld [vmem:[%s282_s5] ss:$0 sm:$0xff] }
   0x8   :  { %v99_v19 = vmul.f32 32.0, %v199_v18  ;;  %vm103_vm2 = vweird.f32 %v199_v18 }
   0xa   :  { %77 = vmatpush.bf16.msra.mxu0 %v187_v2  ;;  %v100_v20 = vsub.f32 1.0, %v99_v19 }
   0xc   :  { %v101_v21 = vmul.f32 %v199_v18, %v100_v20 }
   0xe   :  { %78 = vmatpush.bf16.msra.mxu0 %v186_v3  ;;  %v102_v22 = vadd.f32 %v199_v18, %v101_v21 }
  0x10   :  { %v104_v23 = vsel %vm103_vm2, %v199_v18, %v102_v22 }
  0x11   :  { %184 = vmatmul.msk.bf16.vlgmr.msra.gmra.mxu0 %vm67_vm0, %v185_v4 }
  0x8e   :  { %v80_v8 = vpop.f32.mrf.mxu0 }
  0x8f   :  { %v81_v9 = vadd.f32 %v195_v6, %v80_v8 }
  0x91   :  { %v89_v10 = vadd.f32 %v192_v7, %v81_v9 }
  0x93   :  { %v92_v11 = vsel %vm91_vm1, %v89_v10, 0.0 }
  0x94   :  { %93 = vadd.xlane.f32.xlu0 %v92_v11 }
  0x96   :  { %v82_v13 = vpop.f32.mrf.mxu0 }
  0x97   :  { %v83_v14 = vadd.f32 %v195_v6, %v82_v13 }
  0x99   :  { %v90_v15 = vadd.f32 %v193_v12, %v83_v14 }
  0x9b   :  { %v95_v16 = vsel %vm91_vm1, %v90_v15, 0.0 }
  0x9c   :  { %96 = vadd.xlane.f32.xlu0 %v95_v16 }
 0x107   :  { %v94_v24 = vpop.xlane.xlu0 %93 }
 0x108   :  { %v105_v25 = vmul.f32 %v104_v23, %v94_v24 }
 0x10a   :  { %v107_v26 = vsub.f32 %v89_v10, %v105_v25 }
 0x10c   :  { %v109_v27 = vmul.f32 %v107_v26, %v107_v26 }
 0x10e   :  { %v111_v28 = vsel %vm91_vm1, %v109_v27, 0.0 }
 0x10f   :  { %112 = vadd.xlane.f32.xlu1 %v111_v28  ;;  %v97_v29 = vpop.xlane.xlu0 %96 }
 0x110   :  { %v106_v30 = vmul.f32 %v104_v23, %v97_v29 }
 0x112   :  { %v108_v31 = vsub.f32 %v90_v15, %v106_v30 }
 0x114   :  { %v110_v32 = vmul.f32 %v108_v31, %v108_v31 }
 0x116   :  { %v114_v33 = vsel %vm91_vm1, %v110_v32, 0.0 }
 0x117   :  { %115 = vadd.xlane.f32.xlu1 %v114_v33 }
 0x182   :  { %v113_v34 = vpop.xlane.xlu1 %112 }
 0x183   :  { %v117_v35 = vmul.f32 %v113_v34, %v104_v23 }
 0x185   :  { %v119_v36 = vadd.f32 1e-12, %v117_v35 }
 0x187   :  { %200 = vrsqrt.f32 %v119_v36  ;;  %vm127_vm4 = vweird.f32 %v119_v36 }
 0x18a   :  { %v116_v37 = vpop.xlane.xlu1 %115 }
 0x18b   :  { %v118_v38 = vmul.f32 %v116_v37, %v104_v23 }
 0x18d   :  { %v201_v39 = vpop.eup %200  ;;  %v120_v40 = vadd.f32 1e-12, %v118_v38 }
 0x18e   :  { %v122_v41 = vmul.f32 %v201_v39, %v119_v36  ;;  %vm128_vm3 = vweird.f32 %v201_v39 }
 0x18f   :  { %202 = vrsqrt.f32 %v120_v40  ;;  %vm129_vm5 = vmor %vm127_vm4, %vm128_vm3  ;;  %vm137_vm8 = vweird.f32 %v120_v40 }
 0x190   :  { %v123_v42 = vmul.f32 %v201_v39, %v122_v41 }
 0x192   :  { %v124_v43 = vmul.f32 0.5, %v123_v42 }
 0x194   :  { %v125_v44 = vsub.f32 1.5, %v124_v43 }
 0x195   :  { %v203_v45 = vpop.eup %202 }
 0x196   :  { %v126_v46 = vmul.f32 %v201_v39, %v125_v44  ;;  %v132_v47 = vmul.f32 %v203_v45, %v120_v40  ;;  %vm138_vm6 = vweird.f32 %v203_v45 }
 0x197   :  { %vm139_vm9 = vmor %vm137_vm8, %vm138_vm6 }
 0x198   :  { %v130_v49 = vsel %vm129_vm5, %v201_v39, %v126_v46  ;;  %v133_v50 = vmul.f32 %v203_v45, %v132_v47 }
 0x199   :  { %v141_v52 = vmul.f32 %v130_v49, %v107_v26 }
 0x19a   :  { %v134_v53 = vmul.f32 0.5, %v133_v50 }
 0x19b   :  { %v147_v54 = vmul.f32 %v196_v48, %v141_v52 }
 0x19c   :  { %v135_v55 = vsub.f32 1.5, %v134_v53 }
 0x19d   :  { %v153_v56 = vadd.f32 %v197_v51, %v147_v54 }
 0x19e   :  { %v136_v57 = vmul.f32 %v203_v45, %v135_v55 }
 0x19f   :  { %v155_v58 = vpack.c.bf16 %v153_v56, %v153_v56 }
 0x1a0   :  { %v140_v59 = vsel %vm139_vm9, %v203_v45, %v136_v57 }
 0x1a1   :  { %158 = vst.msk [vmem:[%s283_s6] sm:$0xf] %vm157_vm7, %v155_v58  ;;  %v142_v60 = vmul.f32 %v140_v59, %v108_v31 }
 0x1a3   :  { %v148_v61 = vmul.f32 %v196_v48, %v142_v60 }
 0x1a5   :  { %v154_v62 = vadd.f32 %v197_v51, %v148_v61 }
 0x1a7   :  { %v156_v63 = vpack.c.bf16 %v154_v62, %v154_v62 }
 0x1a9   :  { %159 = vst.msk [vmem:[%s283_s6 + $0x4] sm:$0xf] %vm157_vm7, %v156_v63 }

// kernel: _lambda_.23
= control target key start
LH: loop header
LB: loop body
LE: loop exit
PB: predicated region body
PF: predicated region fallthrough
CT: control target
= control target key end

     0   :  { %10 = vsyncpa [#allocation3], 0  ;;  %s758_s18 = smov 0   ;;  %s853_s0 = inlined_call_operand.vmem [shape: bf16[2,8,32], index: 0, kind: input, shape index: {}]   ;;  %s854_s1 = inlined_call_operand.vmem [shape: bf16[8,320], index: 1, kind: input, shape index: {}]   ;;  %s855_s2 = inlined_call_operand.vmem [shape: f32[1,320], index: 2, kind: input, shape index: {}]   ;;  %s856_s3 = inlined_call_operand.vmem [shape: bf16[320,2], index: 3, kind: input, shape index: {}]   ;;  %s857_s4 = inlined_call_operand.vmem [shape: f32[1,2], index: 4, kind: input, shape index: {}]   ;;  %s858_s5 = inlined_call_operand.hbm [shape: f32[2,2], index: 5, kind: output, shape index: {}]  }
   0x1 LB: > { %s764_s19 = sadd.s32 4294967295, %s725_s18   ;;  %p558_p0 = scmp.ge.s32.totalorder %s725_s18, 1  ;;  %s725_s18 = sphi %s758_s18, %s16_s18  }
   0x2   : > { %p182_p1 = scmp.lt.s32.totalorder %s725_s18, 3 }
   0x4   : > { %p183_p2 = pnand %p558_p0, %p182_p1 }
   0x5   : > { %p204_p3 = scmp.lt.s32.totalorder (!%p183_p2), %s764_s19, 1  ;;  %s727_s27 = smov (!%p183_p2), [#allocation2]  }
   0x6   : > { %186 = sbr.rel (%p183_p2) target bundleno = 433 (0x1b1), region = 40  ;;  %s512_s28 = sshll.u32 (!%p183_p2), %s727_s27, 4  ;;  %s513_s28 = int_to_ptr.vmem [resolvable:$true] %s512_s28 }
   0x7   : > { %s514_s6 = sshll.u32 (!%p183_p2), %s858_s5, 4  ;;  %p676_p4 = scmp.eq.s32.totalorder (!%p183_p2), %s764_s19, 1  ;;  %s515_s6 = int_to_ptr.hbm [resolvable:$true] %s514_s6 }
   0x8   : > { %s669_s7 = scalar_lea.vmem (!%p183_p2), [#allocation2], %s725_s18 }
   0xb   : > { %s205_s20 = scalar_select %p204_p3, %s764_s19, 1  ;;  %vm211_vm0 = vcmask 261120   ;;  %v216_v3 = vld [vmem:[%s854_s1] sm:$0xff]  ;;  %vm244_vm1 = vcmask 1043456   ;;  %v217_v10 = vld [vmem:[%s854_s1 + $0x8] sm:$0xf]  ;;  %v221_v18 = vlaneseq }
   0xc   : > { %v227_v4 = vunpack.c.l.b16 %v216_v3  ;;  %v228_v5 = vunpack.c.h.b16 %v216_v3  ;;  %v229_v11 = vunpack.c.l.b16 %v217_v10  ;;  %v664_v14 = vld [vmem:[%s856_s3 + $0x78] sm:$0xff]  ;;  %v663_v16 = vld [vmem:[%s856_s3 + $0x70] sm:$0xff]  ;;  %v662_v19 = vld [vmem:[%s856_s3 + $0x68] sm:$0xff]  ;;  %vm240_vm2 = vcmask 64512  }
   0xd   : > { %s559_s21 = sshll.u32 %s205_s20, 2  ;;  %v656_v15 = vld [vmem:[%s856_s3 + $0x38] sm:$0xff]  ;;  %477 = vmatpush.bf16.msra.mxu0 %v664_v14  ;;  %v655_v17 = vld [vmem:[%s856_s3 + $0x30] sm:$0xff]  ;;  %v654_v20 = vld [vmem:[%s856_s3 + $0x28] sm:$0xff]  ;;  %v222_v23 = vand.u32 127, %v221_v18  ;;  %vm460_vm3 = vcmask 523264  }
   0xe   : > { %s207_s24 = scalar_lea.vmem %s853_s0, %s559_s21  ;;  %v230_v6 = vpack.c.b16 %v227_v4, %v227_v4  ;;  %v231_v7 = vpack.c.b16 %v228_v5, %v228_v5  ;;  %v232_v12 = vpack.c.b16 %v229_v11, %v229_v11  ;;  %464 = vmatpush.bf16.msra.mxu3 %v656_v15  ;;  %v661_v25 = vld [vmem:[%s856_s3 + $0x60] sm:$0xff]  ;;  %v660_v29 = vld [vmem:[%s856_s3 + $0x58] sm:$0xff]  ;;  %v659_v31 = vld [vmem:[%s856_s3 + $0x50] sm:$0xff]  ;;  %vm504_vm4 = vcmask 8192  }
   0xf   : > { %v209_v0 = vld [vmem:[%s207_s24] sm:$0xf]  ;;  %v652_v30 = vld [vmem:[%s856_s3 + $0x18] sm:$0xff]  ;;  %v658_v32 = vld [vmem:[%s856_s3 + $0x48] sm:$0xff] }
  0x10   : > { %v210_v1 = vunpack.c.l.bf16 %v209_v0  ;;  %v246_v8 = vsel %vm244_vm1, %v230_v6, 0  ;;  %v249_v9 = vsel %vm244_vm1, %v231_v7, 0  ;;  %v252_v13 = vsel %vm244_vm1, %v232_v12, 0  ;;  %v653_v26 = vld [vmem:[%s856_s3 + $0x20] sm:$0xff]  ;;  %v651_v33 = vld [vmem:[%s856_s3 + $0x10] sm:$0xff]  ;;  %v650_v35 = vld [vmem:[%s856_s3 + $0x8] sm:$0xff] }
  0x11   : > { %261 = vmatpush.bf16.msra.mxu2 %v246_v8  ;;  %274 = vmatpush.bf16.msra.mxu1 %v249_v9  ;;  %v657_v34 = vld [vmem:[%s856_s3 + $0x40] sm:$0xff]  ;;  %v668_v37 = vld [vmem:[%s856_s3 + $0x98] sm:$0xff]  ;;  %v667_v38 = vld [vmem:[%s856_s3 + $0x90] sm:$0xff] }
  0x12   : > { %v212_v2 = vsel %vm211_vm0, %v210_v1, -inf  ;;  %478 = vmatpush.bf16.msra.mxu0 %v663_v16  ;;  %465 = vmatpush.bf16.msra.mxu3 %v655_v17  ;;  %v649_v36 = vld [vmem:[%s856_s3] sm:$0xff]  ;;  %v666_v39 = vld [vmem:[%s856_s3 + $0x88] sm:$0xff] }
  0x13   : > { %213 = vmax.xlane.f32.xlu0 %v212_v2  ;;  %v665_v40 = vld [vmem:[%s856_s3 + $0x80] sm:$0xff] }
  0x14   : > { %v218_v41 = vld [vmem:[%s855_s2] sm:$0x7] }
  0x15   : > { %287 = vmatpush.bf16.msrb.mxu2 %v252_v13  ;;  %494 = vmatpush.bf16.msrb.mxu1 %v668_v37  ;;  %v235_v42 = vperm.slane %v218_v41, 1  ;;  %v234_v46 = vperm.slane %v218_v41, 0  ;;  %v236_v54 = vperm.slane %v218_v41, 2  ;;  %v339_v63 = vld [vmem:[%s857_s4] sm:$0x1] }
  0x16   : > { %479 = vmatpush.bf16.msra.mxu0 %v662_v19  ;;  %466 = vmatpush.bf16.msra.mxu3 %v654_v20 }
  0x19   : > { %495 = vmatpush.bf16.msrb.mxu1 %v667_v38 }
  0x1a   : > { %480 = vmatpush.bf16.msra.mxu0 %v661_v25  ;;  %467 = vmatpush.bf16.msra.mxu3 %v653_v26 }
  0x1d   : > { %496 = vmatpush.bf16.msrb.mxu1 %v666_v39 }
  0x1e   : > { %481 = vmatpush.bf16.msra.mxu0 %v660_v29  ;;  %468 = vmatpush.bf16.msra.mxu3 %v652_v30 }
  0x21   : > { %497 = vmatpush.bf16.msrb.mxu1 %v665_v40 }
  0x22   : > { %482 = vmatpush.bf16.msra.mxu0 %v659_v31  ;;  %469 = vmatpush.bf16.msra.mxu3 %v651_v33 }
  0x26   : > { %483 = vmatpush.bf16.msra.mxu0 %v658_v32  ;;  %470 = vmatpush.bf16.msra.mxu3 %v650_v35 }
  0x2a   : > { %484 = vmatpush.bf16.msra.mxu0 %v657_v34  ;;  %471 = vmatpush.bf16.msra.mxu3 %v649_v36 }
  0x86   : > { %v214_v21 = vpop.xlane.xlu0 %213 }
  0x87   : > { %v215_v22 = vpack.c.bf16 %v214_v21, %v214_v21 }
  0x89   : > { %v220_v24 = vunpack.c.l.b16 %v215_v22 }
  0x8b   : > { %v223_v27 = vperm.slane %v220_v24, %v222_v23 }
  0x8d   : > { %v224_v28 = vpack.c.b16 %v223_v27, %v223_v27 }
  0x8f   : > { %560 = vmatmul.msk.bf16.vlgmr.msra.gmra.mxu2 %vm240_vm2, %v224_v28  ;;  %561 = vmatmul.msk.bf16.vlgmr.msra.gmra.mxu1 %vm240_vm2, %v224_v28 }
  0x9f   : > { %562 = vmatmul.msk.bf16.vlgmr.msrb.gmra.mxu2 %vm240_vm2, %v224_v28 }
 0x10c   : > { %v276_v43 = vpop.f32.mrf.mxu1 }
 0x10d   : > { %v277_v44 = vadd.f32 %v276_v43, %v235_v42 }
 0x10f   : > { %v294_v45 = vmax.f32 %v277_v44, 0.0 }
 0x111   : > { %v297_v47 = vpack.c.bf16 %v294_v45, %v294_v45 }
 0x112   : > { %v263_v48 = vpop.f32.mrf.mxu2 }
 0x113   : > { %v264_v49 = vadd.f32 %v263_v48, %v234_v46  ;;  %485 = vmatmul.bf16.vlgmr.msra.gmra.mxu0 %v297_v47 }
 0x114   : > { %v278_v50 = vpop.f32.mrf.mxu1 }
 0x115   : > { %v293_v51 = vmax.f32 %v264_v49, 0.0 }
 0x117   : > { %v296_v52 = vpack.c.bf16 %v293_v51, %v293_v51 }
 0x119   : > { %472 = vmatmul.bf16.vlgmr.msra.gmra.mxu3 %v296_v52 }
 0x11a   : > { %v265_v53 = vpop.f32.mrf.mxu2 }
 0x122   : > { %v289_v55 = vpop.f32.mrf.mxu2 }
 0x123   : > { %v290_v56 = vadd.f32 %v289_v55, %v236_v54 }
 0x125   : > { %v295_v57 = vmax.f32 %v290_v56, 0.0 }
 0x127   : > { %v298_v58 = vpack.c.bf16 %v295_v57, %v295_v57 }
 0x129   : > { %643 = vmatmul.msk.bf16.vlgmr.msrb.gmra.mxu1 %vm460_vm3, %v298_v58 }
 0x12a   : > { %v291_v59 = vpop.f32.mrf.mxu2 }
 0x190   : > { %v486_v60 = vpop.f32.mrf.mxu0 }
 0x198   : > { %v488_v61 = vpop.f32.mrf.mxu0 }
 0x19c   : > { %v473_v62 = vpop.f32.mrf.mxu3 }
 0x19d   : > { %v474_v0 = vadd.f32 %v473_v62, %v339_v63 }
 0x19f   : > { %v487_v2 = vadd.f32 %v486_v60, %v474_v0 }
 0x1a4   : > { %v475_v1 = vpop.f32.mrf.mxu3 }
 0x1a6   : > { %v499_v3 = vpop.f32.mrf.mxu1 }
 0x1a7   : > { %v500_v4 = vadd.f32 %v499_v3, %v487_v2 }
 0x1a9   : > { %671 = vst.msk [vmem:[%s669_s7 - $0x1] sm:$0x1] %vm504_vm4, %v500_v4 }
 0x1aa   : > { %673 = dma.vmem_to_hbm [thread:$0]  (%p676_p4), %s513_s28, 32, %s515_s6, [#allocation3]  }
 0x1ae   : > { %v501_v5 = vpop.f32.mrf.mxu1 }
 0x1af   : > { %720 = dma.done.wait (%p676_p4), [#allocation3], 32  }
 0x1b0   : > { %722 = vsyncadd (%p676_p4), [#allocation3], 4294967264 }
 0x1b1 PF: > { %s16_s18 = sadd.s32 1, %s725_s18  }
 0x1b2   : > { %p13_p5 = scmp.ge.s32.totalorder %s16_s18, 4  }
 0x1b4   :  { %15 = sbr.rel (!%p13_p5) target bundleno = 1 (0x1), region = 68 }
 0x1b9   :  { %528 = vsyncpa [#allocation3], 1 }
 0x1ba   :  { %530 = vsyncpa [#allocation3 + $0x1], 1 }

</bundles_post_ra>
